<compile_context>
chip_gen: v7x
topology: tpu7x:2x2x1
jax: 0.10.0
libtpu: 0.0.40
codegen_flags: <defaults>
</compile_context>

<pallas_src>
import functools
import math

import jax
import jax.numpy as jnp
import numpy as np
from jax.experimental import pallas as pl
from jax.experimental.pallas import tpu as pltpu

_MIB = 1024 * 1024


def _build_band_matrix(L, kernel_sizes):
    """Row-stacked (K*L, L) bf16 band: rows [k*L:(k+1)*L] give, for output row i,
    the number of taps of kernel k that read (replicate-clamped) source row c.
    This folds the PyTorch front/end replicate padding exactly into the matrix."""
    K = len(kernel_sizes)
    band = np.zeros((K * L, L), dtype=np.float32)
    rows = np.arange(L)[:, None]
    for ki, k in enumerate(kernel_sizes):
        assert k <= 256, "window counts must stay exact in bf16"
        front = k - 1 - (k - 1) // 2          # rows prepended in the reference module
        cols = np.clip(rows - front + np.arange(k)[None, :], 0, L - 1)
        np.add.at(band[ki * L:(ki + 1) * L],
                  (np.broadcast_to(rows, cols.shape), cols), 1.0)
    # Counts are small integers -> exact in bf16 (the MXU's native input dtype).
    return jnp.asarray(band).astype(jnp.bfloat16)


def _decomp_kernel(w_ref, b_ref, band_ref, x_ref, res_ref, mean_ref, *,
                   kernel_sizes, stacked):
    """Per (batch-block, channel-tile) grid step.

    w_ref, b_ref : SMEM (K,)        nn.Linear(1, K) weight (squeezed) and bias
    band_ref     : VMEM (K*L, L)    bf16 row-stacked window-count matrices (constant)
    x_ref        : VMEM (nb, L, TC)
    res_ref, mean_ref : VMEM (nb, L, TC)
    """
    nb, L, TC = x_ref.shape
    K = len(kernel_sizes)

    for n in range(nb):
        x = x_ref[n].astype(jnp.float32)                     # (L, TC)

        # Exact-ish 3-way bf16 split (x == hi + mid + lo up to ~2^-26 relative) so
        # the band matmul runs in native bf16 MXU mode with f32 accumulation while
        # keeping ~f32 accuracy.  Lane-concat -> ONE RHS for all components.
        x_hi = x.astype(jnp.bfloat16)
        r1 = x - x_hi.astype(jnp.float32)
        x_mid = r1.astype(jnp.bfloat16)
        x_lo = (r1 - x_mid.astype(jnp.float32)).astype(jnp.bfloat16)
        x_cat = jnp.concatenate([x_hi, x_mid, x_lo], axis=-1)   # (L, 3*TC) bf16

        # Pass 1: streaming max of mixture logits, m = max_k (x * w_k + b_k).
        m = x * w_ref[0] + b_ref[0]
        for i in range(1, K):
            m = jnp.maximum(m, x * w_ref[i] + b_ref[i])

        if stacked:
            # One matmul for all K kernels and all 3 components: (K*L, L)@(L, 3*TC).
            win_all = jnp.dot(band_ref[...], x_cat,
                              preferred_element_type=jnp.float32)

        # Pass 2: streaming softmax-weighted sum of the K moving averages.
        num = jnp.zeros_like(x)
        den = jnp.zeros_like(x)
        for i, k in enumerate(kernel_sizes):
            if stacked:
                wk = win_all[i * L:(i + 1) * L, :]               # (L, 3*TC) f32
            else:
                a = band_ref[pl.ds(i * L, L), :]                 # (L, L) bf16 counts
                wk = jnp.dot(a, x_cat, preferred_element_type=jnp.float32)
            win_sum = wk[:, :TC] + wk[:, TC:2 * TC] + wk[:, 2 * TC:]
            e = jnp.exp(x * w_ref[i] + b_ref[i] - m)             # recompute logit
            den = den + e
            num = num + win_sum * (e * (1.0 / float(k)))         # fold 1/k average

        inv = pl.reciprocal(den, approx=True)                    # EUP slot
        inv = inv * (2.0 - den * inv)                            # one Newton step
        mean = num * inv
        res_ref[n] = (x - mean).astype(res_ref.dtype)
        mean_ref[n] = mean.astype(mean_ref.dtype)


def _vmem_capacity_bytes():
    try:
        info = pltpu.get_tpu_info()
        cap = int(getattr(info, "vmem_capacity_bytes", 0) or 0)
        if cap > 0:
            return cap
    except Exception:
        pass
    return 64 * _MIB        # conservative (v7x) fallback


def _step_bytes(nb, tc, L, K, stacked):
    """Pessimistic per-grid-step VMEM working-set estimate (bytes)."""
    slab = L * tc * 4
    band = K * L * L * 2                                   # constant band (1 buffer)
    io = 6 * nb * slab                                     # 2x-buffered in + 2 outs
    live = ((3 * K if stacked else 3) + 13) * slab * nb    # matmul result + temporaries
    return band + io + live


def _choose_tiling(B, L, c_pad, K, stacked, budget):
    # Largest lane tile (multiple of 128 dividing c_pad) whose working set fits.
    cands = [c_pad] + [t for t in (1024, 768, 512, 384, 256, 128)
                       if t < c_pad and c_pad % t == 0]
    c_tile = 128
    for t in cands:
        if _step_bytes(1, t, L, K, stacked) <= budget:
            c_tile = t
            break
    # Small-C workloads: fold several batches into one grid step so each pipeline
    # step moves a decent slab (amortizes the ~0.35us per-step fixed cost).
    nb = 1
    if c_tile == c_pad and c_pad <= 256:
        for cand in range(min(B, 16), 1, -1):
            if B % cand == 0 and _step_bytes(cand, c_tile, L, K, stacked) <= budget:
                nb = cand
                break
    return nb, c_tile


def series_decomp_multi(x, weight, bias, kernel_sizes):
    """x: (B, L, C); weight, bias: (K,) from nn.Linear(1, K). Returns (res, moving_mean)."""
    B, L, C = x.shape
    kernel_sizes = tuple(int(k) for k in kernel_sizes)
    K = len(kernel_sizes)
    weight = jnp.asarray(weight).reshape(-1)
    bias = jnp.asarray(bias).reshape(-1)

    cap = _vmem_capacity_bytes()
    vmem_limit = 96 * _MIB if cap >= 128 * _MIB else max(32 * _MIB, (cap * 3) // 4)
    budget = int(vmem_limit * 0.7)

    # Row-stack the K band matrices into one MXU LHS while the f32 result slab is
    # small (better 256-wide MXU fill for short L); per-k fused matmuls otherwise.
    stacked = K * L <= 1024

    c_pad = ((C + 127) // 128) * 128                       # lane-dense output stores
    nb, c_tile = _choose_tiling(B, L, c_pad, K, stacked, budget)
    n_ct = c_pad // c_tile
    n_bb = B // nb

    xp = jnp.pad(x, ((0, 0), (0, 0), (0, c_pad - C))) if c_pad != C else x
    band = _build_band_matrix(L, kernel_sizes)             # (K*L, L) bf16

    kernel = functools.partial(_decomp_kernel, kernel_sizes=kernel_sizes,
                               stacked=stacked)
    out_shape = (jax.ShapeDtypeStruct((B, L, c_pad), x.dtype),
                 jax.ShapeDtypeStruct((B, L, c_pad), x.dtype))

    def _make_call(single_buffer_band):
        if single_buffer_band:
            band_spec = pl.BlockSpec((K * L, L), lambda ib, ct: (0, 0),
                                     pipeline_mode=pl.Buffered(1))
        else:
            band_spec = pl.BlockSpec((K * L, L), lambda ib, ct: (0, 0))
        return pl.pallas_call(
            kernel,
            out_shape=out_shape,
            grid=(n_bb, n_ct),
            in_specs=[
                pl.BlockSpec(memory_space=pltpu.SMEM),                      # weight (K,)
                pl.BlockSpec(memory_space=pltpu.SMEM),                      # bias   (K,)
                band_spec,                                                  # constant band
                pl.BlockSpec((nb, L, c_tile), lambda ib, ct: (ib, 0, ct)),  # x block
            ],
            out_specs=[
                pl.BlockSpec((nb, L, c_tile), lambda ib, ct: (ib, 0, ct)),
                pl.BlockSpec((nb, L, c_tile), lambda ib, ct: (ib, 0, ct)),
            ],
            compiler_params=pltpu.CompilerParams(
                dimension_semantics=("parallel", "parallel"),
                vmem_limit_bytes=vmem_limit,
            ),
        )

    try:
        res, mean = _make_call(True)(weight, bias, band, xp)
    except Exception:
        # Fallback if single-buffer pipeline mode is unavailable in this jax build.
        res, mean = _make_call(False)(weight, bias, band, xp)

    if c_pad != C:
        res, mean = res[:, :, :C], mean[:, :, :C]
    return res, mean


def _reference(x, weight, bias, kernel_sizes):
    """Pure-JAX reference matching the PyTorch forward exactly."""
    B, L, C = x.shape
    means = []
    for k in kernel_sizes:
        front_n = k - 1 - math.floor((k - 1) // 2)
        end_n = math.floor((k - 1) // 2)
        front = jnp.repeat(x[:, 0:1, :], front_n, axis=1)
        end = jnp.repeat(x[:, -1:, :], end_n, axis=1)
        xpad = jnp.concatenate([front, x, end], axis=1)    # (B, L+k-1, C)
        windows = jnp.stack([xpad[:, j:j + L, :] for j in range(k)], axis=0)
        means.append(jnp.mean(windows, axis=0))
    moving_mean = jnp.stack(means, axis=-1)                # (B, L, C, K)
    logits = x[..., None] * weight[None, None, None, :] + bias
    sm = jax.nn.softmax(logits, axis=-1)
    mm = jnp.sum(moving_mean * sm, axis=-1)
    return x - mm, mm


if __name__ == "__main__":
    key = jax.random.PRNGKey(0)
    B, L, C = 2, 16, 8
    kernel_sizes = [3, 5]                                  # series_decomp_multi([3, 5])
    K = len(kernel_sizes)

    kx, kw, kb = jax.random.split(key, 3)
    x = jax.random.normal(kx, (B, L, C), dtype=jnp.float32)
    # nn.Linear(1, K): weight (K, 1) -> squeeze to (K,), bias (K,)
    weight = jax.random.uniform(kw, (K,), minval=-1.0, maxval=1.0, dtype=jnp.float32)
    bias = jax.random.uniform(kb, (K,), minval=-1.0, maxval=1.0, dtype=jnp.float32)

    res, mean = series_decomp_multi(x, weight, bias, kernel_sizes)
    jax.block_until_ready((res, mean))

    ref_res, ref_mean = _reference(x, weight, bias, kernel_sizes)
    np.testing.assert_allclose(np.asarray(res), np.asarray(ref_res), rtol=1e-5, atol=1e-5)
    np.testing.assert_allclose(np.asarray(mean), np.asarray(ref_mean), rtol=1e-5, atol=1e-5)

    print("KERNEL_OK")
</pallas_src>

<mosaic_0001>
module attributes {stable_mosaic.version = 11 : i64} {
  func.func @_decomp_kernel(%arg0: i32, %arg1: i32, %arg2: memref<2xf32, #tpu.memory_space<smem>>, %arg3: memref<2xf32, #tpu.memory_space<smem>>, %arg4: memref<32x16xbf16, #tpu.memory_space<vmem>>, %arg5: memref<2x16x128xf32, #tpu.memory_space<vmem>>, %arg6: memref<2x16x128xf32, #tpu.memory_space<vmem>>, %arg7: memref<2x16x128xf32, #tpu.memory_space<vmem>>) attributes {dimension_semantics = [#tpu.dimension_semantics<parallel>, #tpu.dimension_semantics<parallel>], iteration_bounds = array<i64: 1, 1>, scalar_prefetch = 0 : i64, scratch_operands = 0 : i64, tpu.core_type = #tpu.core_type<tc>, window_params = [{transform_indices = @transform_0, window_bounds = array<i64: 2>}, {transform_indices = @transform_1, window_bounds = array<i64: 2>}, {pipeline_mode = #tpu.pipeline_mode<synchronous>, transform_indices = @transform_2, window_bounds = array<i64: 32, 16>}, {transform_indices = @transform_3, window_bounds = array<i64: 2, 16, 128>}, {transform_indices = @transform_4, window_bounds = array<i64: 2, 16, 128>}, {transform_indices = @transform_5, window_bounds = array<i64: 2, 16, 128>}]} {
    %c0 = arith.constant 0 : index
    %c0_0 = arith.constant 0 : index
    %c0_1 = arith.constant 0 : index
    %0 = vector.load %arg5[%c0, %c0_0, %c0_1] : memref<2x16x128xf32, #tpu.memory_space<vmem>>, vector<1x16x128xf32>
    %1 = vector.shape_cast %0 : vector<1x16x128xf32> to vector<16x128xf32>
    %2 = arith.truncf %1 : vector<16x128xf32> to vector<16x128xbf16>
    %3 = arith.extf %2 : vector<16x128xbf16> to vector<16x128xf32>
    %4 = arith.subf %1, %3 : vector<16x128xf32>
    %5 = arith.truncf %4 : vector<16x128xf32> to vector<16x128xbf16>
    %6 = arith.extf %5 : vector<16x128xbf16> to vector<16x128xf32>
    %7 = arith.subf %4, %6 : vector<16x128xf32>
    %8 = arith.truncf %7 : vector<16x128xf32> to vector<16x128xbf16>
    %9 = tpu.concatenate %2, %5, %8 in 1 : vector<16x128xbf16>, vector<16x128xbf16>, vector<16x128xbf16> -> vector<16x384xbf16>
    %c0_2 = arith.constant 0 : index
    %10 = memref.load %arg2[%c0_2] : memref<2xf32, #tpu.memory_space<smem>>
    %11 = vector.broadcast %10 : f32 to vector<16x128xf32>
    %12 = arith.mulf %1, %11 : vector<16x128xf32>
    %c0_3 = arith.constant 0 : index
    %13 = memref.load %arg3[%c0_3] : memref<2xf32, #tpu.memory_space<smem>>
    %14 = vector.broadcast %13 : f32 to vector<16x128xf32>
    %15 = arith.addf %12, %14 : vector<16x128xf32>
    %c1 = arith.constant 1 : index
    %16 = memref.load %arg2[%c1] : memref<2xf32, #tpu.memory_space<smem>>
    %17 = vector.broadcast %16 : f32 to vector<16x128xf32>
    %18 = arith.mulf %1, %17 : vector<16x128xf32>
    %c1_4 = arith.constant 1 : index
    %19 = memref.load %arg3[%c1_4] : memref<2xf32, #tpu.memory_space<smem>>
    %20 = vector.broadcast %19 : f32 to vector<16x128xf32>
    %21 = arith.addf %18, %20 : vector<16x128xf32>
    %22 = arith.maximumf %15, %21 : vector<16x128xf32>
    %c0_5 = arith.constant 0 : index
    %c0_6 = arith.constant 0 : index
    %23 = vector.load %arg4[%c0_5, %c0_6] : memref<32x16xbf16, #tpu.memory_space<vmem>>, vector<32x16xbf16>
    %cst = arith.constant dense<0.000000e+00> : vector<32x384xf32>
    %24 = tpu.matmul %23, %9, %cst {dimension_numbers = #tpu.dot_dimension_numbers<[1], [0], [0], [1], [0, 0, 1, 1], [], []>} : vector<32x16xbf16>, vector<16x384xbf16>, vector<32x384xf32> -> vector<32x384xf32>
    %cst_7 = arith.constant 0.000000e+00 : f32
    %25 = vector.broadcast %cst_7 : f32 to vector<16x128xf32>
    %cst_8 = arith.constant 0.000000e+00 : f32
    %26 = vector.broadcast %cst_8 : f32 to vector<16x128xf32>
    %27 = vector.extract_strided_slice %24 {offsets = [0, 0], sizes = [16, 384], strides = [1, 1]} : vector<32x384xf32> to vector<16x384xf32>
    %28 = vector.extract_strided_slice %27 {offsets = [0, 0], sizes = [16, 128], strides = [1, 1]} : vector<16x384xf32> to vector<16x128xf32>
    %29 = vector.extract_strided_slice %27 {offsets = [0, 128], sizes = [16, 128], strides = [1, 1]} : vector<16x384xf32> to vector<16x128xf32>
    %30 = arith.addf %28, %29 : vector<16x128xf32>
    %31 = vector.extract_strided_slice %27 {offsets = [0, 256], sizes = [16, 128], strides = [1, 1]} : vector<16x384xf32> to vector<16x128xf32>
    %32 = arith.addf %30, %31 : vector<16x128xf32>
    %c0_9 = arith.constant 0 : index
    %33 = memref.load %arg2[%c0_9] : memref<2xf32, #tpu.memory_space<smem>>
    %34 = vector.broadcast %33 : f32 to vector<16x128xf32>
    %35 = arith.mulf %1, %34 : vector<16x128xf32>
    %c0_10 = arith.constant 0 : index
    %36 = memref.load %arg3[%c0_10] : memref<2xf32, #tpu.memory_space<smem>>
    %37 = vector.broadcast %36 : f32 to vector<16x128xf32>
    %38 = arith.addf %35, %37 : vector<16x128xf32>
    %39 = arith.subf %38, %22 : vector<16x128xf32>
    %40 = math.exp %39 : vector<16x128xf32>
    %41 = arith.addf %26, %40 : vector<16x128xf32>
    %cst_11 = arith.constant 0.333333343 : f32
    %42 = vector.broadcast %cst_11 : f32 to vector<16x128xf32>
    %43 = arith.mulf %40, %42 : vector<16x128xf32>
    %44 = arith.mulf %32, %43 : vector<16x128xf32>
    %45 = arith.addf %25, %44 : vector<16x128xf32>
    %46 = vector.extract_strided_slice %24 {offsets = [16, 0], sizes = [16, 384], strides = [1, 1]} : vector<32x384xf32> to vector<16x384xf32>
    %47 = vector.extract_strided_slice %46 {offsets = [0, 0], sizes = [16, 128], strides = [1, 1]} : vector<16x384xf32> to vector<16x128xf32>
    %48 = vector.extract_strided_slice %46 {offsets = [0, 128], sizes = [16, 128], strides = [1, 1]} : vector<16x384xf32> to vector<16x128xf32>
    %49 = arith.addf %47, %48 : vector<16x128xf32>
    %50 = vector.extract_strided_slice %46 {offsets = [0, 256], sizes = [16, 128], strides = [1, 1]} : vector<16x384xf32> to vector<16x128xf32>
    %51 = arith.addf %49, %50 : vector<16x128xf32>
    %c1_12 = arith.constant 1 : index
    %52 = memref.load %arg2[%c1_12] : memref<2xf32, #tpu.memory_space<smem>>
    %53 = vector.broadcast %52 : f32 to vector<16x128xf32>
    %54 = arith.mulf %1, %53 : vector<16x128xf32>
    %c1_13 = arith.constant 1 : index
    %55 = memref.load %arg3[%c1_13] : memref<2xf32, #tpu.memory_space<smem>>
    %56 = vector.broadcast %55 : f32 to vector<16x128xf32>
    %57 = arith.addf %54, %56 : vector<16x128xf32>
    %58 = arith.subf %57, %22 : vector<16x128xf32>
    %59 = math.exp %58 : vector<16x128xf32>
    %60 = arith.addf %41, %59 : vector<16x128xf32>
    %cst_14 = arith.constant 2.000000e-01 : f32
    %61 = vector.broadcast %cst_14 : f32 to vector<16x128xf32>
    %62 = arith.mulf %59, %61 : vector<16x128xf32>
    %63 = arith.mulf %51, %62 : vector<16x128xf32>
    %64 = arith.addf %45, %63 : vector<16x128xf32>
    %65 = tpu.reciprocal %60 {approx = true} : vector<16x128xf32> -> vector<16x128xf32>
    %66 = arith.mulf %60, %65 : vector<16x128xf32>
    %cst_15 = arith.constant 2.000000e+00 : f32
    %67 = vector.broadcast %cst_15 : f32 to vector<16x128xf32>
    %68 = arith.subf %67, %66 : vector<16x128xf32>
    %69 = arith.mulf %65, %68 : vector<16x128xf32>
    %70 = arith.mulf %64, %69 : vector<16x128xf32>
    %71 = arith.subf %1, %70 : vector<16x128xf32>
    %c0_16 = arith.constant 0 : index
    %c0_17 = arith.constant 0 : index
    %c0_18 = arith.constant 0 : index
    %72 = vector.load %arg6[%c0_16, %c0_17, %c0_18] : memref<2x16x128xf32, #tpu.memory_space<vmem>>, vector<1x16x128xf32>
    %73 = vector.shape_cast %72 : vector<1x16x128xf32> to vector<16x128xf32>
    %74 = vector.shape_cast %71 : vector<16x128xf32> to vector<1x16x128xf32>
    tpu.vector_store %arg6[%c0_16, %c0_17, %c0_18], %74 {strides = array<i32>} : memref<2x16x128xf32, #tpu.memory_space<vmem>>, vector<1x16x128xf32>,
    %c0_19 = arith.constant 0 : index
    %c0_20 = arith.constant 0 : index
    %c0_21 = arith.constant 0 : index
    %75 = vector.load %arg7[%c0_19, %c0_20, %c0_21] : memref<2x16x128xf32, #tpu.memory_space<vmem>>, vector<1x16x128xf32>
    %76 = vector.shape_cast %75 : vector<1x16x128xf32> to vector<16x128xf32>
    %77 = vector.shape_cast %70 : vector<16x128xf32> to vector<1x16x128xf32>
    tpu.vector_store %arg7[%c0_19, %c0_20, %c0_21], %77 {strides = array<i32>} : memref<2x16x128xf32, #tpu.memory_space<vmem>>, vector<1x16x128xf32>,
    %c1_22 = arith.constant 1 : index
    %c0_23 = arith.constant 0 : index
    %c0_24 = arith.constant 0 : index
    %78 = vector.load %arg5[%c1_22, %c0_23, %c0_24] : memref<2x16x128xf32, #tpu.memory_space<vmem>>, vector<1x16x128xf32>
    %79 = vector.shape_cast %78 : vector<1x16x128xf32> to vector<16x128xf32>
    %80 = arith.truncf %79 : vector<16x128xf32> to vector<16x128xbf16>
    %81 = arith.extf %80 : vector<16x128xbf16> to vector<16x128xf32>
    %82 = arith.subf %79, %81 : vector<16x128xf32>
    %83 = arith.truncf %82 : vector<16x128xf32> to vector<16x128xbf16>
    %84 = arith.extf %83 : vector<16x128xbf16> to vector<16x128xf32>
    %85 = arith.subf %82, %84 : vector<16x128xf32>
    %86 = arith.truncf %85 : vector<16x128xf32> to vector<16x128xbf16>
    %87 = tpu.concatenate %80, %83, %86 in 1 : vector<16x128xbf16>, vector<16x128xbf16>, vector<16x128xbf16> -> vector<16x384xbf16>
    %c0_25 = arith.constant 0 : index
    %88 = memref.load %arg2[%c0_25] : memref<2xf32, #tpu.memory_space<smem>>
    %89 = vector.broadcast %88 : f32 to vector<16x128xf32>
    %90 = arith.mulf %79, %89 : vector<16x128xf32>
    %c0_26 = arith.constant 0 : index
    %91 = memref.load %arg3[%c0_26] : memref<2xf32, #tpu.memory_space<smem>>
    %92 = vector.broadcast %91 : f32 to vector<16x128xf32>
    %93 = arith.addf %90, %92 : vector<16x128xf32>
    %c1_27 = arith.constant 1 : index
    %94 = memref.load %arg2[%c1_27] : memref<2xf32, #tpu.memory_space<smem>>
    %95 = vector.broadcast %94 : f32 to vector<16x128xf32>
    %96 = arith.mulf %79, %95 : vector<16x128xf32>
    %c1_28 = arith.constant 1 : index
    %97 = memref.load %arg3[%c1_28] : memref<2xf32, #tpu.memory_space<smem>>
    %98 = vector.broadcast %97 : f32 to vector<16x128xf32>
    %99 = arith.addf %96, %98 : vector<16x128xf32>
    %100 = arith.maximumf %93, %99 : vector<16x128xf32>
    %c0_29 = arith.constant 0 : index
    %c0_30 = arith.constant 0 : index
    %101 = vector.load %arg4[%c0_29, %c0_30] : memref<32x16xbf16, #tpu.memory_space<vmem>>, vector<32x16xbf16>
    %cst_31 = arith.constant dense<0.000000e+00> : vector<32x384xf32>
    %102 = tpu.matmul %101, %87, %cst_31 {dimension_numbers = #tpu.dot_dimension_numbers<[1], [0], [0], [1], [0, 0, 1, 1], [], []>} : vector<32x16xbf16>, vector<16x384xbf16>, vector<32x384xf32> -> vector<32x384xf32>
    %cst_32 = arith.constant 0.000000e+00 : f32
    %103 = vector.broadcast %cst_32 : f32 to vector<16x128xf32>
    %cst_33 = arith.constant 0.000000e+00 : f32
    %104 = vector.broadcast %cst_33 : f32 to vector<16x128xf32>
    %105 = vector.extract_strided_slice %102 {offsets = [0, 0], sizes = [16, 384], strides = [1, 1]} : vector<32x384xf32> to vector<16x384xf32>
    %106 = vector.extract_strided_slice %105 {offsets = [0, 0], sizes = [16, 128], strides = [1, 1]} : vector<16x384xf32> to vector<16x128xf32>
    %107 = vector.extract_strided_slice %105 {offsets = [0, 128], sizes = [16, 128], strides = [1, 1]} : vector<16x384xf32> to vector<16x128xf32>
    %108 = arith.addf %106, %107 : vector<16x128xf32>
    %109 = vector.extract_strided_slice %105 {offsets = [0, 256], sizes = [16, 128], strides = [1, 1]} : vector<16x384xf32> to vector<16x128xf32>
    %110 = arith.addf %108, %109 : vector<16x128xf32>
    %c0_34 = arith.constant 0 : index
    %111 = memref.load %arg2[%c0_34] : memref<2xf32, #tpu.memory_space<smem>>
    %112 = vector.broadcast %111 : f32 to vector<16x128xf32>
    %113 = arith.mulf %79, %112 : vector<16x128xf32>
    %c0_35 = arith.constant 0 : index
    %114 = memref.load %arg3[%c0_35] : memref<2xf32, #tpu.memory_space<smem>>
    %115 = vector.broadcast %114 : f32 to vector<16x128xf32>
    %116 = arith.addf %113, %115 : vector<16x128xf32>
    %117 = arith.subf %116, %100 : vector<16x128xf32>
    %118 = math.exp %117 : vector<16x128xf32>
    %119 = arith.addf %104, %118 : vector<16x128xf32>
    %cst_36 = arith.constant 0.333333343 : f32
    %120 = vector.broadcast %cst_36 : f32 to vector<16x128xf32>
    %121 = arith.mulf %118, %120 : vector<16x128xf32>
    %122 = arith.mulf %110, %121 : vector<16x128xf32>
    %123 = arith.addf %103, %122 : vector<16x128xf32>
    %124 = vector.extract_strided_slice %102 {offsets = [16, 0], sizes = [16, 384], strides = [1, 1]} : vector<32x384xf32> to vector<16x384xf32>
    %125 = vector.extract_strided_slice %124 {offsets = [0, 0], sizes = [16, 128], strides = [1, 1]} : vector<16x384xf32> to vector<16x128xf32>
    %126 = vector.extract_strided_slice %124 {offsets = [0, 128], sizes = [16, 128], strides = [1, 1]} : vector<16x384xf32> to vector<16x128xf32>
    %127 = arith.addf %125, %126 : vector<16x128xf32>
    %128 = vector.extract_strided_slice %124 {offsets = [0, 256], sizes = [16, 128], strides = [1, 1]} : vector<16x384xf32> to vector<16x128xf32>
    %129 = arith.addf %127, %128 : vector<16x128xf32>
    %c1_37 = arith.constant 1 : index
    %130 = memref.load %arg2[%c1_37] : memref<2xf32, #tpu.memory_space<smem>>
    %131 = vector.broadcast %130 : f32 to vector<16x128xf32>
    %132 = arith.mulf %79, %131 : vector<16x128xf32>
    %c1_38 = arith.constant 1 : index
    %133 = memref.load %arg3[%c1_38] : memref<2xf32, #tpu.memory_space<smem>>
    %134 = vector.broadcast %133 : f32 to vector<16x128xf32>
    %135 = arith.addf %132, %134 : vector<16x128xf32>
    %136 = arith.subf %135, %100 : vector<16x128xf32>
    %137 = math.exp %136 : vector<16x128xf32>
    %138 = arith.addf %119, %137 : vector<16x128xf32>
    %cst_39 = arith.constant 2.000000e-01 : f32
    %139 = vector.broadcast %cst_39 : f32 to vector<16x128xf32>
    %140 = arith.mulf %137, %139 : vector<16x128xf32>
    %141 = arith.mulf %129, %140 : vector<16x128xf32>
    %142 = arith.addf %123, %141 : vector<16x128xf32>
    %143 = tpu.reciprocal %138 {approx = true} : vector<16x128xf32> -> vector<16x128xf32>
    %144 = arith.mulf %138, %143 : vector<16x128xf32>
    %cst_40 = arith.constant 2.000000e+00 : f32
    %145 = vector.broadcast %cst_40 : f32 to vector<16x128xf32>
    %146 = arith.subf %145, %144 : vector<16x128xf32>
    %147 = arith.mulf %143, %146 : vector<16x128xf32>
    %148 = arith.mulf %142, %147 : vector<16x128xf32>
    %149 = arith.subf %79, %148 : vector<16x128xf32>
    %c1_41 = arith.constant 1 : index
    %c0_42 = arith.constant 0 : index
    %c0_43 = arith.constant 0 : index
    %150 = vector.load %arg6[%c1_41, %c0_42, %c0_43] : memref<2x16x128xf32, #tpu.memory_space<vmem>>, vector<1x16x128xf32>
    %151 = vector.shape_cast %150 : vector<1x16x128xf32> to vector<16x128xf32>
    %152 = vector.shape_cast %149 : vector<16x128xf32> to vector<1x16x128xf32>
    tpu.vector_store %arg6[%c1_41, %c0_42, %c0_43], %152 {strides = array<i32>} : memref<2x16x128xf32, #tpu.memory_space<vmem>>, vector<1x16x128xf32>,
    %c1_44 = arith.constant 1 : index
    %c0_45 = arith.constant 0 : index
    %c0_46 = arith.constant 0 : index
    %153 = vector.load %arg7[%c1_44, %c0_45, %c0_46] : memref<2x16x128xf32, #tpu.memory_space<vmem>>, vector<1x16x128xf32>
    %154 = vector.shape_cast %153 : vector<1x16x128xf32> to vector<16x128xf32>
    %155 = vector.shape_cast %148 : vector<16x128xf32> to vector<1x16x128xf32>
    tpu.vector_store %arg7[%c1_44, %c0_45, %c0_46], %155 {strides = array<i32>} : memref<2x16x128xf32, #tpu.memory_space<vmem>>, vector<1x16x128xf32>,
    return
  }
  func.func @transform_0(%arg0: i32, %arg1: i32) -> i32 {
    %c0_i32 = arith.constant 0 : i32
    %c0_i32_0 = arith.constant 0 : i32
    return %c0_i32 : i32
  }
  func.func @transform_1(%arg0: i32, %arg1: i32) -> i32 {
    %c0_i32 = arith.constant 0 : i32
    %c0_i32_0 = arith.constant 0 : i32
    return %c0_i32 : i32
  }
  func.func @transform_2(%arg0: i32, %arg1: i32) -> (i32, i32) {
    %c0_i32 = arith.constant 0 : i32
    %c0_i32_0 = arith.constant 0 : i32
    %c0_i32_1 = arith.constant 0 : i32
    return %c0_i32, %c0_i32_0 : i32, i32
  }
  func.func @transform_3(%arg0: i32, %arg1: i32) -> (i32, i32, i32) {
    %c0_i32 = arith.constant 0 : i32
    %c0_i32_0 = arith.constant 0 : i32
    return %arg0, %c0_i32, %arg1 : i32, i32, i32
  }
  func.func @transform_4(%arg0: i32, %arg1: i32) -> (i32, i32, i32) {
    %c0_i32 = arith.constant 0 : i32
    %c0_i32_0 = arith.constant 0 : i32
    return %arg0, %c0_i32, %arg1 : i32, i32, i32
  }
  func.func @transform_5(%arg0: i32, %arg1: i32) -> (i32, i32, i32) {
    %c0_i32 = arith.constant 0 : i32
    %c0_i32_0 = arith.constant 0 : i32
    return %arg0, %c0_i32, %arg1 : i32, i32, i32
  }
}

module attributes {stable_mosaic.version = 11 : i64} {
  func.func @_decomp_kernel(%arg0: i32, %arg1: i32, %arg2: memref<2xf32, #tpu.memory_space<smem>>, %arg3: memref<2xf32, #tpu.memory_space<smem>>, %arg4: memref<32x16xbf16, #tpu.memory_space<vmem>>, %arg5: memref<2x16x128xf32, #tpu.memory_space<vmem>>, %arg6: memref<2x16x128xf32, #tpu.memory_space<vmem>>, %arg7: memref<2x16x128xf32, #tpu.memory_space<vmem>>) attributes {dimension_semantics = [#tpu.dimension_semantics<parallel>, #tpu.dimension_semantics<parallel>], iteration_bounds = array<i64: 1, 1>, scalar_prefetch = 0 : i64, scratch_operands = 0 : i64, tpu.core_type = #tpu.core_type<tc>, window_params = [{transform_indices = @transform_0, window_bounds = array<i64: 2>}, {transform_indices = @transform_1, window_bounds = array<i64: 2>}, {pipeline_mode = #tpu.pipeline_mode<synchronous>, transform_indices = @transform_2, window_bounds = array<i64: 32, 16>}, {transform_indices = @transform_3, window_bounds = array<i64: 2, 16, 128>}, {transform_indices = @transform_4, window_bounds = array<i64: 2, 16, 128>}, {transform_indices = @transform_5, window_bounds = array<i64: 2, 16, 128>}]} {
    %c0 = arith.constant 0 : index
    %c0_0 = arith.constant 0 : index
    %c0_1 = arith.constant 0 : index
    %0 = vector.load %arg5[%c0, %c0_0, %c0_1] : memref<2x16x128xf32, #tpu.memory_space<vmem>>, vector<1x16x128xf32>
    %1 = vector.shape_cast %0 : vector<1x16x128xf32> to vector<16x128xf32>
    %2 = arith.truncf %1 : vector<16x128xf32> to vector<16x128xbf16>
    %3 = arith.extf %2 : vector<16x128xbf16> to vector<16x128xf32>
    %4 = arith.subf %1, %3 : vector<16x128xf32>
    %5 = arith.truncf %4 : vector<16x128xf32> to vector<16x128xbf16>
    %6 = arith.extf %5 : vector<16x128xbf16> to vector<16x128xf32>
    %7 = arith.subf %4, %6 : vector<16x128xf32>
    %8 = arith.truncf %7 : vector<16x128xf32> to vector<16x128xbf16>
    %9 = tpu.concatenate %2, %5, %8 in 1 : vector<16x128xbf16>, vector<16x128xbf16>, vector<16x128xbf16> -> vector<16x384xbf16>
    %c0_2 = arith.constant 0 : index
    %10 = memref.load %arg2[%c0_2] : memref<2xf32, #tpu.memory_space<smem>>
    %11 = vector.broadcast %10 : f32 to vector<16x128xf32>
    %12 = arith.mulf %1, %11 : vector<16x128xf32>
    %c0_3 = arith.constant 0 : index
    %13 = memref.load %arg3[%c0_3] : memref<2xf32, #tpu.memory_space<smem>>
    %14 = vector.broadcast %13 : f32 to vector<16x128xf32>
    %15 = arith.addf %12, %14 : vector<16x128xf32>
    %c1 = arith.constant 1 : index
    %16 = memref.load %arg2[%c1] : memref<2xf32, #tpu.memory_space<smem>>
    %17 = vector.broadcast %16 : f32 to vector<16x128xf32>
    %18 = arith.mulf %1, %17 : vector<16x128xf32>
    %c1_4 = arith.constant 1 : index
    %19 = memref.load %arg3[%c1_4] : memref<2xf32, #tpu.memory_space<smem>>
    %20 = vector.broadcast %19 : f32 to vector<16x128xf32>
    %21 = arith.addf %18, %20 : vector<16x128xf32>
    %22 = arith.maximumf %15, %21 : vector<16x128xf32>
    %c0_5 = arith.constant 0 : index
    %c0_6 = arith.constant 0 : index
    %23 = vector.load %arg4[%c0_5, %c0_6] : memref<32x16xbf16, #tpu.memory_space<vmem>>, vector<32x16xbf16>
    %cst = arith.constant dense<0.000000e+00> : vector<32x384xf32>
    %24 = tpu.matmul %23, %9, %cst {dimension_numbers = #tpu.dot_dimension_numbers<[1], [0], [0], [1], [0, 0, 1, 1], [], []>} : vector<32x16xbf16>, vector<16x384xbf16>, vector<32x384xf32> -> vector<32x384xf32>
    %cst_7 = arith.constant 0.000000e+00 : f32
    %25 = vector.broadcast %cst_7 : f32 to vector<16x128xf32>
    %cst_8 = arith.constant 0.000000e+00 : f32
    %26 = vector.broadcast %cst_8 : f32 to vector<16x128xf32>
    %27 = vector.extract_strided_slice %24 {offsets = [0, 0], sizes = [16, 384], strides = [1, 1]} : vector<32x384xf32> to vector<16x384xf32>
    %28 = vector.extract_strided_slice %27 {offsets = [0, 0], sizes = [16, 128], strides = [1, 1]} : vector<16x384xf32> to vector<16x128xf32>
    %29 = vector.extract_strided_slice %27 {offsets = [0, 128], sizes = [16, 128], strides = [1, 1]} : vector<16x384xf32> to vector<16x128xf32>
    %30 = arith.addf %28, %29 : vector<16x128xf32>
    %31 = vector.extract_strided_slice %27 {offsets = [0, 256], sizes = [16, 128], strides = [1, 1]} : vector<16x384xf32> to vector<16x128xf32>
    %32 = arith.addf %30, %31 : vector<16x128xf32>
    %c0_9 = arith.constant 0 : index
    %33 = memref.load %arg2[%c0_9] : memref<2xf32, #tpu.memory_space<smem>>
    %34 = vector.broadcast %33 : f32 to vector<16x128xf32>
    %35 = arith.mulf %1, %34 : vector<16x128xf32>
    %c0_10 = arith.constant 0 : index
    %36 = memref.load %arg3[%c0_10] : memref<2xf32, #tpu.memory_space<smem>>
    %37 = vector.broadcast %36 : f32 to vector<16x128xf32>
    %38 = arith.addf %35, %37 : vector<16x128xf32>
    %39 = arith.subf %38, %22 : vector<16x128xf32>
    %40 = math.exp %39 : vector<16x128xf32>
    %41 = arith.addf %26, %40 : vector<16x128xf32>
    %cst_11 = arith.constant 0.333333343 : f32
    %42 = vector.broadcast %cst_11 : f32 to vector<16x128xf32>
    %43 = arith.mulf %40, %42 : vector<16x128xf32>
    %44 = arith.mulf %32, %43 : vector<16x128xf32>
    %45 = arith.addf %25, %44 : vector<16x128xf32>
    %46 = vector.extract_strided_slice %24 {offsets = [16, 0], sizes = [16, 384], strides = [1, 1]} : vector<32x384xf32> to vector<16x384xf32>
    %47 = vector.extract_strided_slice %46 {offsets = [0, 0], sizes = [16, 128], strides = [1, 1]} : vector<16x384xf32> to vector<16x128xf32>
    %48 = vector.extract_strided_slice %46 {offsets = [0, 128], sizes = [16, 128], strides = [1, 1]} : vector<16x384xf32> to vector<16x128xf32>
    %49 = arith.addf %47, %48 : vector<16x128xf32>
    %50 = vector.extract_strided_slice %46 {offsets = [0, 256], sizes = [16, 128], strides = [1, 1]} : vector<16x384xf32> to vector<16x128xf32>
    %51 = arith.addf %49, %50 : vector<16x128xf32>
    %c1_12 = arith.constant 1 : index
    %52 = memref.load %arg2[%c1_12] : memref<2xf32, #tpu.memory_space<smem>>
    %53 = vector.broadcast %52 : f32 to vector<16x128xf32>
    %54 = arith.mulf %1, %53 : vector<16x128xf32>
    %c1_13 = arith.constant 1 : index
    %55 = memref.load %arg3[%c1_13] : memref<2xf32, #tpu.memory_space<smem>>
    %56 = vector.broadcast %55 : f32 to vector<16x128xf32>
    %57 = arith.addf %54, %56 : vector<16x128xf32>
    %58 = arith.subf %57, %22 : vector<16x128xf32>
    %59 = math.exp %58 : vector<16x128xf32>
    %60 = arith.addf %41, %59 : vector<16x128xf32>
    %cst_14 = arith.constant 2.000000e-01 : f32
    %61 = vector.broadcast %cst_14 : f32 to vector<16x128xf32>
    %62 = arith.mulf %59, %61 : vector<16x128xf32>
    %63 = arith.mulf %51, %62 : vector<16x128xf32>
    %64 = arith.addf %45, %63 : vector<16x128xf32>
    %65 = tpu.reciprocal %60 {approx = true} : vector<16x128xf32> -> vector<16x128xf32>
    %66 = arith.mulf %60, %65 : vector<16x128xf32>
    %cst_15 = arith.constant 2.000000e+00 : f32
    %67 = vector.broadcast %cst_15 : f32 to vector<16x128xf32>
    %68 = arith.subf %67, %66 : vector<16x128xf32>
    %69 = arith.mulf %65, %68 : vector<16x128xf32>
    %70 = arith.mulf %64, %69 : vector<16x128xf32>
    %71 = arith.subf %1, %70 : vector<16x128xf32>
    %c0_16 = arith.constant 0 : index
    %c0_17 = arith.constant 0 : index
    %c0_18 = arith.constant 0 : index
    %72 = vector.load %arg6[%c0_16, %c0_17, %c0_18] : memref<2x16x128xf32, #tpu.memory_space<vmem>>, vector<1x16x128xf32>
    %73 = vector.shape_cast %72 : vector<1x16x128xf32> to vector<16x128xf32>
    %74 = vector.shape_cast %71 : vector<16x128xf32> to vector<1x16x128xf32>
    tpu.vector_store %arg6[%c0_16, %c0_17, %c0_18], %74 {strides = array<i32>} : memref<2x16x128xf32, #tpu.memory_space<vmem>>, vector<1x16x128xf32>,
    %c0_19 = arith.constant 0 : index
    %c0_20 = arith.constant 0 : index
    %c0_21 = arith.constant 0 : index
    %75 = vector.load %arg7[%c0_19, %c0_20, %c0_21] : memref<2x16x128xf32, #tpu.memory_space<vmem>>, vector<1x16x128xf32>
    %76 = vector.shape_cast %75 : vector<1x16x128xf32> to vector<16x128xf32>
    %77 = vector.shape_cast %70 : vector<16x128xf32> to vector<1x16x128xf32>
    tpu.vector_store %arg7[%c0_19, %c0_20, %c0_21], %77 {strides = array<i32>} : memref<2x16x128xf32, #tpu.memory_space<vmem>>, vector<1x16x128xf32>,
    %c1_22 = arith.constant 1 : index
    %c0_23 = arith.constant 0 : index
    %c0_24 = arith.constant 0 : index
    %78 = vector.load %arg5[%c1_22, %c0_23, %c0_24] : memref<2x16x128xf32, #tpu.memory_space<vmem>>, vector<1x16x128xf32>
    %79 = vector.shape_cast %78 : vector<1x16x128xf32> to vector<16x128xf32>
    %80 = arith.truncf %79 : vector<16x128xf32> to vector<16x128xbf16>
    %81 = arith.extf %80 : vector<16x128xbf16> to vector<16x128xf32>
    %82 = arith.subf %79, %81 : vector<16x128xf32>
    %83 = arith.truncf %82 : vector<16x128xf32> to vector<16x128xbf16>
    %84 = arith.extf %83 : vector<16x128xbf16> to vector<16x128xf32>
    %85 = arith.subf %82, %84 : vector<16x128xf32>
    %86 = arith.truncf %85 : vector<16x128xf32> to vector<16x128xbf16>
    %87 = tpu.concatenate %80, %83, %86 in 1 : vector<16x128xbf16>, vector<16x128xbf16>, vector<16x128xbf16> -> vector<16x384xbf16>
    %c0_25 = arith.constant 0 : index
    %88 = memref.load %arg2[%c0_25] : memref<2xf32, #tpu.memory_space<smem>>
    %89 = vector.broadcast %88 : f32 to vector<16x128xf32>
    %90 = arith.mulf %79, %89 : vector<16x128xf32>
    %c0_26 = arith.constant 0 : index
    %91 = memref.load %arg3[%c0_26] : memref<2xf32, #tpu.memory_space<smem>>
    %92 = vector.broadcast %91 : f32 to vector<16x128xf32>
    %93 = arith.addf %90, %92 : vector<16x128xf32>
    %c1_27 = arith.constant 1 : index
    %94 = memref.load %arg2[%c1_27] : memref<2xf32, #tpu.memory_space<smem>>
    %95 = vector.broadcast %94 : f32 to vector<16x128xf32>
    %96 = arith.mulf %79, %95 : vector<16x128xf32>
    %c1_28 = arith.constant 1 : index
    %97 = memref.load %arg3[%c1_28] : memref<2xf32, #tpu.memory_space<smem>>
    %98 = vector.broadcast %97 : f32 to vector<16x128xf32>
    %99 = arith.addf %96, %98 : vector<16x128xf32>
    %100 = arith.maximumf %93, %99 : vector<16x128xf32>
    %c0_29 = arith.constant 0 : index
    %c0_30 = arith.constant 0 : index
    %101 = vector.load %arg4[%c0_29, %c0_30] : memref<32x16xbf16, #tpu.memory_space<vmem>>, vector<32x16xbf16>
    %cst_31 = arith.constant dense<0.000000e+00> : vector<32x384xf32>
    %102 = tpu.matmul %101, %87, %cst_31 {dimension_numbers = #tpu.dot_dimension_numbers<[1], [0], [0], [1], [0, 0, 1, 1], [], []>} : vector<32x16xbf16>, vector<16x384xbf16>, vector<32x384xf32> -> vector<32x384xf32>
    %cst_32 = arith.constant 0.000000e+00 : f32
    %103 = vector.broadcast %cst_32 : f32 to vector<16x128xf32>
    %cst_33 = arith.constant 0.000000e+00 : f32
    %104 = vector.broadcast %cst_33 : f32 to vector<16x128xf32>
    %105 = vector.extract_strided_slice %102 {offsets = [0, 0], sizes = [16, 384], strides = [1, 1]} : vector<32x384xf32> to vector<16x384xf32>
    %106 = vector.extract_strided_slice %105 {offsets = [0, 0], sizes = [16, 128], strides = [1, 1]} : vector<16x384xf32> to vector<16x128xf32>
    %107 = vector.extract_strided_slice %105 {offsets = [0, 128], sizes = [16, 128], strides = [1, 1]} : vector<16x384xf32> to vector<16x128xf32>
    %108 = arith.addf %106, %107 : vector<16x128xf32>
    %109 = vector.extract_strided_slice %105 {offsets = [0, 256], sizes = [16, 128], strides = [1, 1]} : vector<16x384xf32> to vector<16x128xf32>
    %110 = arith.addf %108, %109 : vector<16x128xf32>
    %c0_34 = arith.constant 0 : index
    %111 = memref.load %arg2[%c0_34] : memref<2xf32, #tpu.memory_space<smem>>
    %112 = vector.broadcast %111 : f32 to vector<16x128xf32>
    %113 = arith.mulf %79, %112 : vector<16x128xf32>
    %c0_35 = arith.constant 0 : index
    %114 = memref.load %arg3[%c0_35] : memref<2xf32, #tpu.memory_space<smem>>
    %115 = vector.broadcast %114 : f32 to vector<16x128xf32>
    %116 = arith.addf %113, %115 : vector<16x128xf32>
    %117 = arith.subf %116, %100 : vector<16x128xf32>
    %118 = math.exp %117 : vector<16x128xf32>
    %119 = arith.addf %104, %118 : vector<16x128xf32>
    %cst_36 = arith.constant 0.333333343 : f32
    %120 = vector.broadcast %cst_36 : f32 to vector<16x128xf32>
    %121 = arith.mulf %118, %120 : vector<16x128xf32>
    %122 = arith.mulf %110, %121 : vector<16x128xf32>
    %123 = arith.addf %103, %122 : vector<16x128xf32>
    %124 = vector.extract_strided_slice %102 {offsets = [16, 0], sizes = [16, 384], strides = [1, 1]} : vector<32x384xf32> to vector<16x384xf32>
    %125 = vector.extract_strided_slice %124 {offsets = [0, 0], sizes = [16, 128], strides = [1, 1]} : vector<16x384xf32> to vector<16x128xf32>
    %126 = vector.extract_strided_slice %124 {offsets = [0, 128], sizes = [16, 128], strides = [1, 1]} : vector<16x384xf32> to vector<16x128xf32>
    %127 = arith.addf %125, %126 : vector<16x128xf32>
    %128 = vector.extract_strided_slice %124 {offsets = [0, 256], sizes = [16, 128], strides = [1, 1]} : vector<16x384xf32> to vector<16x128xf32>
    %129 = arith.addf %127, %128 : vector<16x128xf32>
    %c1_37 = arith.constant 1 : index
    %130 = memref.load %arg2[%c1_37] : memref<2xf32, #tpu.memory_space<smem>>
    %131 = vector.broadcast %130 : f32 to vector<16x128xf32>
    %132 = arith.mulf %79, %131 : vector<16x128xf32>
    %c1_38 = arith.constant 1 : index
    %133 = memref.load %arg3[%c1_38] : memref<2xf32, #tpu.memory_space<smem>>
    %134 = vector.broadcast %133 : f32 to vector<16x128xf32>
    %135 = arith.addf %132, %134 : vector<16x128xf32>
    %136 = arith.subf %135, %100 : vector<16x128xf32>
    %137 = math.exp %136 : vector<16x128xf32>
    %138 = arith.addf %119, %137 : vector<16x128xf32>
    %cst_39 = arith.constant 2.000000e-01 : f32
    %139 = vector.broadcast %cst_39 : f32 to vector<16x128xf32>
    %140 = arith.mulf %137, %139 : vector<16x128xf32>
    %141 = arith.mulf %129, %140 : vector<16x128xf32>
    %142 = arith.addf %123, %141 : vector<16x128xf32>
    %143 = tpu.reciprocal %138 {approx = true} : vector<16x128xf32> -> vector<16x128xf32>
    %144 = arith.mulf %138, %143 : vector<16x128xf32>
    %cst_40 = arith.constant 2.000000e+00 : f32
    %145 = vector.broadcast %cst_40 : f32 to vector<16x128xf32>
    %146 = arith.subf %145, %144 : vector<16x128xf32>
    %147 = arith.mulf %143, %146 : vector<16x128xf32>
    %148 = arith.mulf %142, %147 : vector<16x128xf32>
    %149 = arith.subf %79, %148 : vector<16x128xf32>
    %c1_41 = arith.constant 1 : index
    %c0_42 = arith.constant 0 : index
    %c0_43 = arith.constant 0 : index
    %150 = vector.load %arg6[%c1_41, %c0_42, %c0_43] : memref<2x16x128xf32, #tpu.memory_space<vmem>>, vector<1x16x128xf32>
    %151 = vector.shape_cast %150 : vector<1x16x128xf32> to vector<16x128xf32>
    %152 = vector.shape_cast %149 : vector<16x128xf32> to vector<1x16x128xf32>
    tpu.vector_store %arg6[%c1_41, %c0_42, %c0_43], %152 {strides = array<i32>} : memref<2x16x128xf32, #tpu.memory_space<vmem>>, vector<1x16x128xf32>,
    %c1_44 = arith.constant 1 : index
    %c0_45 = arith.constant 0 : index
    %c0_46 = arith.constant 0 : index
    %153 = vector.load %arg7[%c1_44, %c0_45, %c0_46] : memref<2x16x128xf32, #tpu.memory_space<vmem>>, vector<1x16x128xf32>
    %154 = vector.shape_cast %153 : vector<1x16x128xf32> to vector<16x128xf32>
    %155 = vector.shape_cast %148 : vector<16x128xf32> to vector<1x16x128xf32>
    tpu.vector_store %arg7[%c1_44, %c0_45, %c0_46], %155 {strides = array<i32>} : memref<2x16x128xf32, #tpu.memory_space<vmem>>, vector<1x16x128xf32>,
    return
  }
  func.func @transform_0(%arg0: i32, %arg1: i32) -> i32 {
    %c0_i32 = arith.constant 0 : i32
    %c0_i32_0 = arith.constant 0 : i32
    return %c0_i32 : i32
  }
  func.func @transform_1(%arg0: i32, %arg1: i32) -> i32 {
    %c0_i32 = arith.constant 0 : i32
    %c0_i32_0 = arith.constant 0 : i32
    return %c0_i32 : i32
  }
  func.func @transform_2(%arg0: i32, %arg1: i32) -> (i32, i32) {
    %c0_i32 = arith.constant 0 : i32
    %c0_i32_0 = arith.constant 0 : i32
    %c0_i32_1 = arith.constant 0 : i32
    return %c0_i32, %c0_i32_0 : i32, i32
  }
  func.func @transform_3(%arg0: i32, %arg1: i32) -> (i32, i32, i32) {
    %c0_i32 = arith.constant 0 : i32
    %c0_i32_0 = arith.constant 0 : i32
    return %arg0, %c0_i32, %arg1 : i32, i32, i32
  }
  func.func @transform_4(%arg0: i32, %arg1: i32) -> (i32, i32, i32) {
    %c0_i32 = arith.constant 0 : i32
    %c0_i32_0 = arith.constant 0 : i32
    return %arg0, %c0_i32, %arg1 : i32, i32, i32
  }
  func.func @transform_5(%arg0: i32, %arg1: i32) -> (i32, i32, i32) {
    %c0_i32 = arith.constant 0 : i32
    %c0_i32_0 = arith.constant 0 : i32
    return %arg0, %c0_i32, %arg1 : i32, i32, i32
  }
}

</mosaic_0001>

<bundles_post_ra>
// kernel: tpu_custom_call.1
= control target key start
LH: loop header
LB: loop body
LE: loop exit
PB: predicated region body
PF: predicated region fallthrough
CT: control target
= control target key end

     0   :  { %11 = vsyncpa [#allocation4], 0  ;;  %s792_s0 = inlined_call_operand.vmem [shape: f32[2], index: 0, kind: input, shape index: {}]   ;;  %s793_s1 = inlined_call_operand.vmem [shape: f32[2], index: 1, kind: input, shape index: {}]   ;;  %s794_s2 = inlined_call_operand.vmem [shape: bf16[32,16], index: 2, kind: input, shape index: {}]   ;;  %s795_s3 = inlined_call_operand.vmem [shape: f32[2,16,128], index: 3, kind: input, shape index: {}]   ;;  %s796_s4 = inlined_call_operand.hbm [shape: f32[2,16,128], index: 4, kind: output, shape index: {0}]   ;;  %s797_s5 = inlined_call_operand.hbm [shape: f32[2,16,128], index: 5, kind: output, shape index: {1}]  }
   0x1   :  { %12 = vsyncpa [#allocation6], 0 }
   0x2   :  { %13 = vsyncpa [#allocation3], 0 }
   0x3   :  { %14 = vsyncpa [#allocation9], 0  ;;  %s21_s20 = sshll.u32 %s792_s0, 4  ;;  %s31_s23 = sshll.u32 %s793_s1, 4  ;;  %s22_s20 = int_to_ptr.vmem [resolvable:$true] %s21_s20  ;;  %s32_s23 = int_to_ptr.vmem [resolvable:$true] %s31_s23 }
   0x4   :  { %s566_s24 = scalar_lea.vmem %s22_s20, 16  ;;  %p571_p1 = scmp.lt.s32.totalorder %s22_s20, %s22_s20 }
   0x5   :  { %p567_p0 = scmp.ne.s32.totalorder %s22_s20, %s566_s24  ;;  %p572_p2 = scmp.lt.s32.totalorder %s566_s24, %s566_s24 }
   0x7   :  { %p573_p3 = por %p572_p2, %p571_p1 }
   0x9   :  { %p574_p4 = pnand %p573_p3, %p567_p0 }
   0xb   :  { %577 = shalt.err (!%p574_p4)
}
   0xc   :  { %s642_s25 = smov [#allocation2]   ;;  %s578_s26 = scalar_lea.vmem %s32_s23, 16 }
   0xd   :  { %24 = dma.vmem_to_smem %s22_s20, 16, %s642_s25, [#allocation4]  }
   0xe   :  { %p579_p5 = scmp.ne.s32.totalorder %s32_s23, %s578_s26  ;;  %p583_p6 = scmp.lt.s32.totalorder %s32_s23, %s32_s23 }
   0xf   :  { %p584_p7 = scmp.lt.s32.totalorder %s578_s26, %s578_s26 }
  0x11   :  { %p585_p8 = por %p584_p7, %p583_p6 }
  0x13   :  { %p586_p9 = pnand %p585_p8, %p579_p5 }
  0x15   :  { %589 = shalt.err (!%p586_p9)
}
  0x16   :  { %s643_s0 = smov [#allocation5]  }
  0x17   :  { %34 = dma.vmem_to_smem %s32_s23, 16, %s643_s0, [#allocation6]  }
  0x18   :  { %634 = dma.done.wait [#allocation4], 16  }
  0x19   :  { %635 = vsyncadd [#allocation4], 4294967280 }
  0x1a   :  { %636 = dma.done.wait [#allocation6], 16  }
  0x1b   :  { %637 = vsyncadd [#allocation6], 4294967280 }
  0x1c   :  { %45 = sfence }
  0x1d   :  { %v688_v0 = vld [vmem:[%s795_s3] sm:$0xff]  ;;  %v693_v1 = vld [vmem:[%s795_s3 + $0x8] sm:$0xff]  ;;  %v644_v4 = vmov 0   ;;  %vm92_vm0 = vcmask 130048   ;;  %v704_v7 = vld [vmem:[%s795_s3 + $0x10] sm:$0xff]  ;;  %s60_s16 = sld [smem:[#allocation2]] }
  0x1e   :  { %v49_v2 = vpack.c.bf16 %v693_v1, %v688_v0  ;;  %v538_v3 = vld [vmem:[%s794_s2] sm:$0xff]   ;;  %131 = vmatprep.mubr.bf16.mxu0 %v644_v4  ;;  %v709_v8 = vld [vmem:[%s795_s3 + $0x18] sm:$0xff]  ;;  %v539_v27 = vld [vmem:[%s794_s2 + $0x8] sm:$0xff]   ;;  %s495_s17 = sld [smem:[#allocation2 + $0x1]]  ;;  %s64_s18 = sld [smem:[#allocation5]] }
  0x1f   :  { %521 = vmatprep.mubr.msk.bf16.mxu1 %vm92_vm0, %v538_v3  ;;  %v256_v9 = vpack.c.bf16 %v709_v8, %v704_v7  ;;  %v540_v29 = vld [vmem:[%s794_s2] sm:$0xff]   ;;  %v541_v30 = vld [vmem:[%s794_s2 + $0x8] sm:$0xff]   ;;  %s496_s19 = sld [smem:[#allocation5 + $0x1]]  ;;  %s645_s2 = smov [#allocation8]  }
  0x20   :  { %v50_v5 = vunpack.c.l.bf16 %v49_v2  ;;  %v51_v6 = vunpack.c.h.bf16 %v49_v2  ;;  %s478_s20 = sshll.u32 %s645_s2, 4  ;;  %s646_s21 = smov [#allocation7]   ;;  %s479_s20 = int_to_ptr.vmem [resolvable:$true] %s478_s20 }
  0x21   :  { %v257_v12 = vunpack.c.l.bf16 %v256_v9  ;;  %v258_v13 = vunpack.c.h.bf16 %v256_v9  ;;  %s466_s22 = sshll.u32 %s646_s21, 4  ;;  %s590_s23 = scalar_lea.vmem %s479_s20, 512  ;;  %s761_s22 = int_to_ptr.vmem [resolvable:$true] %s466_s22 }
  0x22   :  { %v52_v10 = vsub.f32 %v688_v0, %v50_v5  ;;  %v53_v11 = vsub.f32 %v693_v1, %v51_v6  ;;  %p591_p10 = scmp.ne.s32.totalorder %s479_s20, %s590_s23  ;;  %p595_p11 = scmp.lt.s32.totalorder %s479_s20, %s479_s20 }
  0x23   :  { %v259_v15 = vsub.f32 %v704_v7, %v257_v12  ;;  %v260_v16 = vsub.f32 %v709_v8, %v258_v13  ;;  %v61_v31 = vstv %s60_s16  ;;  %p596_p12 = scmp.lt.s32.totalorder %s590_s23, %s590_s23 }
  0x24   :  { %v54_v14 = vpack.c.bf16 %v53_v11, %v52_v10  ;;  %v69_v32 = vstv %s495_s17  ;;  %v62_v33 = vmul.f32 %v61_v31, %v688_v0  ;;  %v65_v35 = vstv %s64_s18 }
  0x25   :  { %v261_v19 = vpack.c.bf16 %v260_v16, %v259_v15  ;;  %v70_v34 = vmul.f32 %v69_v32, %v688_v0  ;;  %v73_v36 = vstv %s496_s19  ;;  %v63_v37 = vmul.f32 %v61_v31, %v693_v1  ;;  %p597_p13 = por %p596_p12, %p595_p11 }
  0x26   :  { %99 = vmatprep.subr.bf16.mxu0 %v54_v14  ;;  %v55_v17 = vunpack.c.l.bf16 %v54_v14  ;;  %v56_v18 = vunpack.c.h.bf16 %v54_v14  ;;  %v71_v38 = vmul.f32 %v69_v32, %v693_v1  ;;  %v66_v39 = vadd.f32 %v65_v35, %v62_v33 }
  0x27   :  { %100 = vmatpush1.bf16.msra.mxu0 %v49_v2  ;;  %v262_v22 = vunpack.c.l.bf16 %v261_v19  ;;  %v263_v23 = vunpack.c.h.bf16 %v261_v19  ;;  %v74_v40 = vadd.f32 %v73_v36, %v70_v34  ;;  %v67_v41 = vadd.f32 %v65_v35, %v63_v37  ;;  %p598_p0 = pnand %p597_p13, %p591_p10 }
  0x28   :  { %v57_v20 = vsub.f32 %v52_v10, %v55_v17  ;;  %v58_v21 = vsub.f32 %v53_v11, %v56_v18  ;;  %v75_v42 = vadd.f32 %v73_v36, %v71_v38  ;;  %v269_v48 = vmul.f32 %v704_v7, %v61_v31 }
  0x29   :  { %v264_v25 = vsub.f32 %v259_v15, %v262_v22  ;;  %v265_v26 = vsub.f32 %v260_v16, %v263_v23  ;;  %v76_v43 = vmax.f32 %v66_v39, %v74_v40  ;;  %v277_v49 = vmul.f32 %v704_v7, %v69_v32 }
  0x2a   :  { %499 = vmatmul.mubr.msk.bf16.vlgmr.msra.gmra.mrb[0].mxu0 %vm92_vm0, %v538_v3  ;;  %v59_v24 = vpack.c.bf16 %v58_v21, %v57_v20  ;;  %v77_v44 = vmax.f32 %v67_v41, %v75_v42  ;;  %v270_v52 = vmul.f32 %v709_v8, %v61_v31  ;;  %v278_v53 = vmul.f32 %v709_v8, %v69_v32 }
  0x2b   :  { %141 = vmatprep.mubr.bf16.mxu0 %v644_v4  ;;  %v266_v28 = vpack.c.bf16 %v265_v26, %v264_v25  ;;  %v205_v45 = vsub.f32 %v66_v39, %v76_v43  ;;  %v223_v46 = vsub.f32 %v74_v40, %v76_v43  ;;  %v273_v57 = vadd.f32 %v269_v48, %v65_v35 }
  0x2c   :  { %519 = vmatprep.subr.bf16.mxu1 %v59_v24  ;;  %v206_v47 = vsub.f32 %v67_v41, %v77_v44  ;;  %v224_v50 = vsub.f32 %v75_v42, %v77_v44  ;;  %v281_v58 = vadd.f32 %v277_v49, %v73_v36  ;;  %v274_v59 = vadd.f32 %v270_v52, %v65_v35 }
  0x2d   :  { %520 = vmatpush3.bf16.msra.mxu1 %v59_v24  ;;  %525 = vmatprep.subr.bf16.mxu0 %v266_v28  ;;  %v207_v51 = vmul.f32 1.442695, %v205_v45  ;;  %v225_v54 = vmul.f32 1.442695, %v223_v46  ;;  %v282_v60 = vadd.f32 %v278_v53, %v73_v36 }
  0x2e   :  { %305 = vmatprep.subr.bf16.mxu1 %v261_v19  ;;  %526 = vmatpush3.bf16.msra.mxu0 %v266_v28  ;;  %v209_v55 = vmul.f32 1.442695, %v206_v47  ;;  %v227_v56 = vmul.f32 1.442695, %v224_v50  ;;  %v283_v61 = vmax.f32 %v273_v57, %v281_v58 }
  0x2f   :  { %542 = vpow2.f32 %v207_v51  ;;  %v284_v62 = vmax.f32 %v274_v59, %v282_v60 }
  0x30   :  { %522 = vmatmul.mubr.msk.bf16.vlgmr.msra.gmra.mrb[0].mxu1 %vm92_vm0, %v539_v27  ;;  %544 = vpow2.f32 %v225_v54  ;;  %v411_v63 = vsub.f32 %v273_v57, %v283_v61  ;;  %v429_v2 = vsub.f32 %v281_v58, %v283_v61 }
  0x31   :  { %306 = vmatpush1.bf16.msra.mxu1 %v256_v9  ;;  %337 = vmatprep.mubr.bf16.mxu1 %v644_v4  ;;  %546 = vpow2.f32 %v209_v55  ;;  %v412_v3 = vsub.f32 %v274_v59, %v284_v62  ;;  %v430_v5 = vsub.f32 %v282_v60, %v284_v62 }
  0x32   :  { %500 = vmatmul.mubr.msk.bf16.gmra.mrb[4].mxu0 %vm92_vm0, %v539_v27  ;;  %548 = vpow2.f32 %v227_v56  ;;  %v413_v9 = vmul.f32 1.442695, %v411_v63  ;;  %v431_v11 = vmul.f32 1.442695, %v429_v2 }
  0x33   :  { %527 = vmatprep.mubr.msk.bf16.mxu0 %vm92_vm0, %v540_v29  ;;  %v415_v13 = vmul.f32 1.442695, %v412_v3  ;;  %v433_v14 = vmul.f32 1.442695, %v430_v5 }
  0x34   :  { %550 = vpow2.f32 %v413_v9 }
  0x35   :  { %552 = vpow2.f32 %v431_v11 }
  0x36   :  { %554 = vpow2.f32 %v415_v13 }
  0x37   :  { %556 = vpow2.f32 %v433_v14 }
  0x38   :  { %509 = vmatmul.mubr.msk.bf16.vlgmr.msra.gmra.mrb[4].mxu1 %vm92_vm0, %v540_v29 }
  0x39   :  { %347 = vmatprep.mubr.bf16.mxu1 %v644_v4  ;;  %v543_v4 = vpop.eup %542 }
  0x3a   :  { %528 = vmatmul.mubr.msk.bf16.vlgmr.msra.gmra.mrb[8].mxu0 %vm92_vm0, %v541_v30  ;;  %v545_v6 = vpop.eup %544  ;;  %v213_v38 = vmul.f32 0.33333334, %v543_v4 }
  0x3b   :  { %v547_v10 = vpop.eup %546  ;;  %v229_v15 = vadd.f32 %v545_v6, %v543_v4  ;;  %v231_v42 = vmul.f32 0.2, %v545_v6 }
  0x3c   :  { %v549_v12 = vpop.eup %548  ;;  %v214_v49 = vmul.f32 0.33333334, %v547_v10 }
  0x3d   :  { %v230_v16 = vadd.f32 %v549_v12, %v547_v10  ;;  %558 = vrcp.f32 %v229_v15  ;;  %v232_v51 = vmul.f32 0.2, %v549_v12 }
  0x3e   :  { %v741_v17 = vpop.eup %550 }
  0x3f   :  { %560 = vrcp.f32 %v230_v16  ;;  %v743_v18 = vpop.eup %552 }
  0x40   :  { %510 = vmatmul.mubr.msk.bf16.gmra.mrb[8].mxu1 %vm92_vm0, %v541_v30  ;;  %v745_v20 = vpop.eup %554  ;;  %v435_v27 = vadd.f32 %v743_v18, %v741_v17 }
  0x41   :  { %v747_v22 = vpop.eup %556 }
  0x42   :  { %v436_v30 = vadd.f32 %v747_v22, %v745_v20  ;;  %562 = vrcp.f32 %v435_v27 }
  0x44   :  { %564 = vrcp.f32 %v436_v30 }
  0x47   :  { %v559_v25 = vpop.eup %558 }
  0x48   :  { %v239_v32 = vmul.f32 %v559_v25, %v229_v15 }
  0x49   :  { %v561_v28 = vpop.eup %560 }
  0x4a   :  { %v240_v34 = vmul.f32 %v561_v28, %v230_v16  ;;  %v241_v43 = vsub.f32 2.0, %v239_v32 }
  0x4c   :  { %v242_v47 = vsub.f32 2.0, %v240_v34  ;;  %v243_v54 = vmul.f32 %v559_v25, %v241_v43  ;;  %v563_v3 = vpop.eup %562 }
  0x4e   :  { %v244_v57 = vmul.f32 %v561_v28, %v242_v47  ;;  %v565_v13 = vpop.eup %564  ;;  %v419_v28 = vmul.f32 0.33333334, %v741_v17 }
  0x4f   :  { %v446_v25 = vmul.f32 %v565_v13, %v436_v30 }
  0xfd   :  { %v133_v19 = vpop.f32.mrb[0].mxu0 }
  0xfe   :  { %v135_v21 = vpop.f32.mrb[1].mxu0 }
  0xff   :  { %v201_v23 = vadd.f32 %v135_v21, %v133_v19  ;;  %v137_v24 = vpop.f32.mrb[2].mxu0  ;;  %v445_v21 = vmul.f32 %v563_v3, %v435_v27 }
 0x100   :  { %v139_v26 = vpop.f32.mrb[3].mxu0 }
 0x101   :  { %v202_v29 = vadd.f32 %v139_v26, %v137_v24  ;;  %v447_v32 = vsub.f32 2.0, %v445_v21 }
 0x103   :  { %v523_v31 = vpop.f32.mrb[0].mxu1  ;;  %v449_v30 = vmul.f32 %v563_v3, %v447_v32 }
 0x104   :  { %v186_v33 = vpop.f32.mrb[1].mxu1 }
 0x105   :  { %v203_v35 = vadd.f32 %v201_v23, %v186_v33  ;;  %v143_v36 = vpop.f32.mrb[4].mxu0  ;;  %v524_v37 = vpop.f32.mrb[2].mxu1 }
 0x106   :  { %v145_v39 = vpop.f32.mrb[5].mxu0  ;;  %v189_v40 = vpop.f32.mrb[3].mxu1 }
 0x107   :  { %v219_v41 = vadd.f32 %v145_v39, %v143_v36  ;;  %v204_v44 = vadd.f32 %v202_v29, %v189_v40  ;;  %v147_v45 = vpop.f32.mrb[6].mxu0  ;;  %v215_v52 = vmul.f32 %v213_v38, %v203_v35  ;;  %v438_v36 = vmul.f32 0.2, %v747_v22 }
 0x108   :  { %v149_v46 = vpop.f32.mrb[7].mxu0 }
 0x109   :  { %v221_v48 = vadd.f32 %v523_v31, %v219_v41  ;;  %v220_v50 = vadd.f32 %v149_v46, %v147_v45  ;;  %v216_v60 = vmul.f32 %v214_v49, %v204_v44  ;;  %v437_v31 = vmul.f32 0.2, %v743_v18 }
 0x10b   :  { %v233_v53 = vmul.f32 %v231_v42, %v221_v48  ;;  %v222_v55 = vadd.f32 %v524_v37, %v220_v50  ;;  %v339_v56 = vpop.f32.mrb[4].mxu1 }
 0x10c   :  { %v341_v58 = vpop.f32.mrb[5].mxu1 }
 0x10d   :  { %v235_v59 = vadd.f32 %v233_v53, %v215_v52  ;;  %v234_v61 = vmul.f32 %v232_v51, %v222_v55  ;;  %v407_v62 = vadd.f32 %v341_v58, %v339_v56  ;;  %v343_v63 = vpop.f32.mrb[6].mxu1  ;;  %v529_v2 = vpop.f32.mrb[8].mxu0 }
 0x10e   :  { %v345_v4 = vpop.f32.mrb[7].mxu1  ;;  %v392_v5 = vpop.f32.mrb[9].mxu0 }
 0x10f   :  { %v245_v6 = vmul.f32 %v243_v54, %v235_v59  ;;  %v236_v9 = vadd.f32 %v234_v61, %v216_v60  ;;  %v408_v10 = vadd.f32 %v345_v4, %v343_v63  ;;  %v409_v11 = vadd.f32 %v407_v62, %v392_v5  ;;  %v530_v12 = vpop.f32.mrb[10].mxu0 }
 0x110   :  { %v395_v14 = vpop.f32.mrb[11].mxu0 }
 0x111   :  { %v247_v15 = vsub.f32 %v688_v0, %v245_v6  ;;  %251 = vst [vmem:[#allocation8] sm:$0xff] %v245_v6  ;;  %v246_v16 = vmul.f32 %v244_v57, %v236_v9  ;;  %v410_v19 = vadd.f32 %v408_v10, %v395_v14  ;;  %v420_v0 = vmul.f32 0.33333334, %v745_v20 }
 0x112   :  { %v421_v37 = vmul.f32 %v419_v28, %v409_v11 }
 0x113   :  { %249 = vst [vmem:[#allocation7] sm:$0xff] %v247_v15  ;;  %v248_v23 = vsub.f32 %v693_v1, %v246_v16  ;;  %252 = vst [vmem:[#allocation8 + $0x8] sm:$0xff] %v246_v16  ;;  %v349_v24 = vpop.f32.mrb[8].mxu1  ;;  %v448_v1 = vsub.f32 2.0, %v446_v25  ;;  %v422_v40 = vmul.f32 %v420_v0, %v410_v19 }
 0x114   :  { %v351_v26 = vpop.f32.mrb[9].mxu1 }
 0x115   :  { %250 = vst [vmem:[#allocation7 + $0x8] sm:$0xff] %v248_v23  ;;  %v425_v29 = vadd.f32 %v351_v26, %v349_v24  ;;  %v353_v33 = vpop.f32.mrb[10].mxu1  ;;  %v450_v42 = vmul.f32 %v565_v13, %v448_v1 }
 0x116   :  { %v355_v34 = vpop.f32.mrb[11].mxu1 }
 0x117   :  { %v427_v35 = vadd.f32 %v529_v2, %v425_v29  ;;  %v426_v27 = vadd.f32 %v355_v34, %v353_v33 }
 0x119   :  { %v439_v38 = vmul.f32 %v437_v31, %v427_v35  ;;  %v428_v39 = vadd.f32 %v530_v12, %v426_v27 }
 0x11b   :  { %v441_v41 = vadd.f32 %v439_v38, %v421_v37  ;;  %v440_v17 = vmul.f32 %v438_v36, %v428_v39 }
 0x11d   :  { %v451_v18 = vmul.f32 %v449_v30, %v441_v41  ;;  %v442_v43 = vadd.f32 %v440_v17, %v422_v40 }
 0x11f   :  { %v453_v20 = vsub.f32 %v704_v7, %v451_v18  ;;  %459 = vst [vmem:[#allocation8 + $0x10] sm:$0xff] %v451_v18  ;;  %v452_v44 = vmul.f32 %v450_v42, %v442_v43 }
 0x121   :  { %456 = vst [vmem:[#allocation7 + $0x10] sm:$0xff] %v453_v20  ;;  %v454_v22 = vsub.f32 %v709_v8, %v452_v44  ;;  %460 = vst [vmem:[#allocation8 + $0x18] sm:$0xff] %v452_v44 }
 0x122   :  { %601 = shalt.err (!%p598_p0)
}
 0x123   :  { %s602_s26 = scalar_lea.hbm %s797_s5, 512 }
 0x124   :  { %p603_p1 = scmp.ne.s32.totalorder %s797_s5, %s602_s26  ;;  %p606_p2 = scmp.lt.u32.totalorder %s602_s26, %s797_s5 }
 0x126   :  { %p608_p3 = pnand %p606_p2, %p603_p1 }
 0x128   :  { %611 = shalt.err (!%p608_p3)
}
 0x129   :  { %s647_s29 = smov 128   ;;  %s648_s30 = smov 8   ;;  %457 = vst [vmem:[#allocation7 + $0x18] sm:$0xff] %v454_v22 }
 0x12a   :  { %484 = dma.vmem_to_hbm [thread:$0]  %s479_s20, 512, %s797_s5, [#allocation9], %s647_s29, %s647_s29, %s648_s30  }
 0x12b   :  { %s612_s8 = scalar_lea.vmem %s761_s22, 512  ;;  %p617_p5 = scmp.lt.s32.totalorder %s761_s22, %s761_s22 }
 0x12c   :  { %p613_p4 = scmp.ne.s32.totalorder %s761_s22, %s612_s8  ;;  %p618_p6 = scmp.lt.s32.totalorder %s612_s8, %s612_s8 }
 0x12e   :  { %p619_p7 = por %p618_p6, %p617_p5 }
 0x130   :  { %p620_p8 = pnand %p619_p7, %p613_p4 }
 0x132   :  { %623 = shalt.err (!%p620_p8)
}
 0x133   :  { %s624_s3 = scalar_lea.hbm %s796_s4, 512 }
 0x134   :  { %p625_p9 = scmp.ne.s32.totalorder %s796_s4, %s624_s3  ;;  %p628_p10 = scmp.lt.u32.totalorder %s624_s3, %s796_s4 }
 0x136   :  { %p630_p11 = pnand %p628_p10, %p625_p9 }
 0x138   :  { %633 = shalt.err (!%p630_p11)
}
 0x139   :  { %472 = dma.vmem_to_hbm [thread:$0]  %s761_s22, 512, %s796_s4, [#allocation3], %s647_s29, %s647_s29, %s648_s30  }
 0x13a   :  { %638 = dma.done.wait [#allocation3], 512  }
 0x13b   :  { %639 = vsyncadd [#allocation3], 4294966784 }
 0x13c   :  { %640 = dma.done.wait [#allocation9], 512  }
 0x13d   :  { %641 = vsyncadd [#allocation9], 4294966784 }
 0x13e   :  { %491 = vsyncpa [#allocation3], 1 }
 0x13f   :  { %492 = vsyncpa [#allocation9], 1 }
 0x140   :  { %493 = vsyncpa [#allocation4], 1 }
 0x141   :  { %494 = vsyncpa [#allocation6], 1 }

// kernel: tpu_custom_call.1
= control target key start
LH: loop header
LB: loop body
LE: loop exit
PB: predicated region body
PF: predicated region fallthrough
CT: control target
= control target key end

     0   :  { %11 = vsyncpa [#allocation4], 0  ;;  %s792_s0 = inlined_call_operand.vmem [shape: f32[2], index: 0, kind: input, shape index: {}]   ;;  %s793_s1 = inlined_call_operand.vmem [shape: f32[2], index: 1, kind: input, shape index: {}]   ;;  %s794_s2 = inlined_call_operand.vmem [shape: bf16[32,16], index: 2, kind: input, shape index: {}]   ;;  %s795_s3 = inlined_call_operand.vmem [shape: f32[2,16,128], index: 3, kind: input, shape index: {}]   ;;  %s796_s4 = inlined_call_operand.hbm [shape: f32[2,16,128], index: 4, kind: output, shape index: {0}]   ;;  %s797_s5 = inlined_call_operand.hbm [shape: f32[2,16,128], index: 5, kind: output, shape index: {1}]  }
   0x1   :  { %12 = vsyncpa [#allocation6], 0 }
   0x2   :  { %13 = vsyncpa [#allocation3], 0 }
   0x3   :  { %14 = vsyncpa [#allocation9], 0  ;;  %s21_s20 = sshll.u32 %s792_s0, 4  ;;  %s31_s23 = sshll.u32 %s793_s1, 4  ;;  %s22_s20 = int_to_ptr.vmem [resolvable:$true] %s21_s20  ;;  %s32_s23 = int_to_ptr.vmem [resolvable:$true] %s31_s23 }
   0x4   :  { %s566_s24 = scalar_lea.vmem %s22_s20, 16  ;;  %p571_p1 = scmp.lt.s32.totalorder %s22_s20, %s22_s20 }
   0x5   :  { %p567_p0 = scmp.ne.s32.totalorder %s22_s20, %s566_s24  ;;  %p572_p2 = scmp.lt.s32.totalorder %s566_s24, %s566_s24 }
   0x7   :  { %p573_p3 = por %p572_p2, %p571_p1 }
   0x9   :  { %p574_p4 = pnand %p573_p3, %p567_p0 }
   0xb   :  { %577 = shalt.err (!%p574_p4)
}
   0xc   :  { %s642_s25 = smov [#allocation2]   ;;  %s578_s26 = scalar_lea.vmem %s32_s23, 16 }
   0xd   :  { %24 = dma.vmem_to_smem %s22_s20, 16, %s642_s25, [#allocation4]  }
   0xe   :  { %p579_p5 = scmp.ne.s32.totalorder %s32_s23, %s578_s26  ;;  %p583_p6 = scmp.lt.s32.totalorder %s32_s23, %s32_s23 }
   0xf   :  { %p584_p7 = scmp.lt.s32.totalorder %s578_s26, %s578_s26 }
  0x11   :  { %p585_p8 = por %p584_p7, %p583_p6 }
  0x13   :  { %p586_p9 = pnand %p585_p8, %p579_p5 }
  0x15   :  { %589 = shalt.err (!%p586_p9)
}
  0x16   :  { %s643_s0 = smov [#allocation5]  }
  0x17   :  { %34 = dma.vmem_to_smem %s32_s23, 16, %s643_s0, [#allocation6]  }
  0x18   :  { %634 = dma.done.wait [#allocation4], 16  }
  0x19   :  { %635 = vsyncadd [#allocation4], 4294967280 }
  0x1a   :  { %636 = dma.done.wait [#allocation6], 16  }
  0x1b   :  { %637 = vsyncadd [#allocation6], 4294967280 }
  0x1c   :  { %45 = sfence }
  0x1d   :  { %v688_v0 = vld [vmem:[%s795_s3] sm:$0xff]  ;;  %v693_v1 = vld [vmem:[%s795_s3 + $0x8] sm:$0xff]  ;;  %v644_v4 = vmov 0   ;;  %vm92_vm0 = vcmask 130048   ;;  %v704_v7 = vld [vmem:[%s795_s3 + $0x10] sm:$0xff]  ;;  %s60_s16 = sld [smem:[#allocation2]] }
  0x1e   :  { %v49_v2 = vpack.c.bf16 %v693_v1, %v688_v0  ;;  %v538_v3 = vld [vmem:[%s794_s2] sm:$0xff]   ;;  %131 = vmatprep.mubr.bf16.mxu0 %v644_v4  ;;  %v709_v8 = vld [vmem:[%s795_s3 + $0x18] sm:$0xff]  ;;  %v539_v27 = vld [vmem:[%s794_s2 + $0x8] sm:$0xff]   ;;  %s495_s17 = sld [smem:[#allocation2 + $0x1]]  ;;  %s64_s18 = sld [smem:[#allocation5]] }
  0x1f   :  { %521 = vmatprep.mubr.msk.bf16.mxu1 %vm92_vm0, %v538_v3  ;;  %v256_v9 = vpack.c.bf16 %v709_v8, %v704_v7  ;;  %v540_v29 = vld [vmem:[%s794_s2] sm:$0xff]   ;;  %v541_v30 = vld [vmem:[%s794_s2 + $0x8] sm:$0xff]   ;;  %s496_s19 = sld [smem:[#allocation5 + $0x1]]  ;;  %s645_s2 = smov [#allocation8]  }
  0x20   :  { %v50_v5 = vunpack.c.l.bf16 %v49_v2  ;;  %v51_v6 = vunpack.c.h.bf16 %v49_v2  ;;  %s478_s20 = sshll.u32 %s645_s2, 4  ;;  %s646_s21 = smov [#allocation7]   ;;  %s479_s20 = int_to_ptr.vmem [resolvable:$true] %s478_s20 }
  0x21   :  { %v257_v12 = vunpack.c.l.bf16 %v256_v9  ;;  %v258_v13 = vunpack.c.h.bf16 %v256_v9  ;;  %s466_s22 = sshll.u32 %s646_s21, 4  ;;  %s590_s23 = scalar_lea.vmem %s479_s20, 512  ;;  %s761_s22 = int_to_ptr.vmem [resolvable:$true] %s466_s22 }
  0x22   :  { %v52_v10 = vsub.f32 %v688_v0, %v50_v5  ;;  %v53_v11 = vsub.f32 %v693_v1, %v51_v6  ;;  %p591_p10 = scmp.ne.s32.totalorder %s479_s20, %s590_s23  ;;  %p595_p11 = scmp.lt.s32.totalorder %s479_s20, %s479_s20 }
  0x23   :  { %v259_v15 = vsub.f32 %v704_v7, %v257_v12  ;;  %v260_v16 = vsub.f32 %v709_v8, %v258_v13  ;;  %v61_v31 = vstv %s60_s16  ;;  %p596_p12 = scmp.lt.s32.totalorder %s590_s23, %s590_s23 }
  0x24   :  { %v54_v14 = vpack.c.bf16 %v53_v11, %v52_v10  ;;  %v69_v32 = vstv %s495_s17  ;;  %v62_v33 = vmul.f32 %v61_v31, %v688_v0  ;;  %v65_v35 = vstv %s64_s18 }
  0x25   :  { %v261_v19 = vpack.c.bf16 %v260_v16, %v259_v15  ;;  %v70_v34 = vmul.f32 %v69_v32, %v688_v0  ;;  %v73_v36 = vstv %s496_s19  ;;  %v63_v37 = vmul.f32 %v61_v31, %v693_v1  ;;  %p597_p13 = por %p596_p12, %p595_p11 }
  0x26   :  { %99 = vmatprep.subr.bf16.mxu0 %v54_v14  ;;  %v55_v17 = vunpack.c.l.bf16 %v54_v14  ;;  %v56_v18 = vunpack.c.h.bf16 %v54_v14  ;;  %v71_v38 = vmul.f32 %v69_v32, %v693_v1  ;;  %v66_v39 = vadd.f32 %v65_v35, %v62_v33 }
  0x27   :  { %100 = vmatpush1.bf16.msra.mxu0 %v49_v2  ;;  %v262_v22 = vunpack.c.l.bf16 %v261_v19  ;;  %v263_v23 = vunpack.c.h.bf16 %v261_v19  ;;  %v74_v40 = vadd.f32 %v73_v36, %v70_v34  ;;  %v67_v41 = vadd.f32 %v65_v35, %v63_v37  ;;  %p598_p0 = pnand %p597_p13, %p591_p10 }
  0x28   :  { %v57_v20 = vsub.f32 %v52_v10, %v55_v17  ;;  %v58_v21 = vsub.f32 %v53_v11, %v56_v18  ;;  %v75_v42 = vadd.f32 %v73_v36, %v71_v38  ;;  %v269_v48 = vmul.f32 %v704_v7, %v61_v31 }
  0x29   :  { %v264_v25 = vsub.f32 %v259_v15, %v262_v22  ;;  %v265_v26 = vsub.f32 %v260_v16, %v263_v23  ;;  %v76_v43 = vmax.f32 %v66_v39, %v74_v40  ;;  %v277_v49 = vmul.f32 %v704_v7, %v69_v32 }
  0x2a   :  { %499 = vmatmul.mubr.msk.bf16.vlgmr.msra.gmra.mrb[0].mxu0 %vm92_vm0, %v538_v3  ;;  %v59_v24 = vpack.c.bf16 %v58_v21, %v57_v20  ;;  %v77_v44 = vmax.f32 %v67_v41, %v75_v42  ;;  %v270_v52 = vmul.f32 %v709_v8, %v61_v31  ;;  %v278_v53 = vmul.f32 %v709_v8, %v69_v32 }
  0x2b   :  { %141 = vmatprep.mubr.bf16.mxu0 %v644_v4  ;;  %v266_v28 = vpack.c.bf16 %v265_v26, %v264_v25  ;;  %v205_v45 = vsub.f32 %v66_v39, %v76_v43  ;;  %v223_v46 = vsub.f32 %v74_v40, %v76_v43  ;;  %v273_v57 = vadd.f32 %v269_v48, %v65_v35 }
  0x2c   :  { %519 = vmatprep.subr.bf16.mxu1 %v59_v24  ;;  %v206_v47 = vsub.f32 %v67_v41, %v77_v44  ;;  %v224_v50 = vsub.f32 %v75_v42, %v77_v44  ;;  %v281_v58 = vadd.f32 %v277_v49, %v73_v36  ;;  %v274_v59 = vadd.f32 %v270_v52, %v65_v35 }
  0x2d   :  { %520 = vmatpush3.bf16.msra.mxu1 %v59_v24  ;;  %525 = vmatprep.subr.bf16.mxu0 %v266_v28  ;;  %v207_v51 = vmul.f32 1.442695, %v205_v45  ;;  %v225_v54 = vmul.f32 1.442695, %v223_v46  ;;  %v282_v60 = vadd.f32 %v278_v53, %v73_v36 }
  0x2e   :  { %305 = vmatprep.subr.bf16.mxu1 %v261_v19  ;;  %526 = vmatpush3.bf16.msra.mxu0 %v266_v28  ;;  %v209_v55 = vmul.f32 1.442695, %v206_v47  ;;  %v227_v56 = vmul.f32 1.442695, %v224_v50  ;;  %v283_v61 = vmax.f32 %v273_v57, %v281_v58 }
  0x2f   :  { %542 = vpow2.f32 %v207_v51  ;;  %v284_v62 = vmax.f32 %v274_v59, %v282_v60 }
  0x30   :  { %522 = vmatmul.mubr.msk.bf16.vlgmr.msra.gmra.mrb[0].mxu1 %vm92_vm0, %v539_v27  ;;  %544 = vpow2.f32 %v225_v54  ;;  %v411_v63 = vsub.f32 %v273_v57, %v283_v61  ;;  %v429_v2 = vsub.f32 %v281_v58, %v283_v61 }
  0x31   :  { %306 = vmatpush1.bf16.msra.mxu1 %v256_v9  ;;  %337 = vmatprep.mubr.bf16.mxu1 %v644_v4  ;;  %546 = vpow2.f32 %v209_v55  ;;  %v412_v3 = vsub.f32 %v274_v59, %v284_v62  ;;  %v430_v5 = vsub.f32 %v282_v60, %v284_v62 }
  0x32   :  { %500 = vmatmul.mubr.msk.bf16.gmra.mrb[4].mxu0 %vm92_vm0, %v539_v27  ;;  %548 = vpow2.f32 %v227_v56  ;;  %v413_v9 = vmul.f32 1.442695, %v411_v63  ;;  %v431_v11 = vmul.f32 1.442695, %v429_v2 }
  0x33   :  { %527 = vmatprep.mubr.msk.bf16.mxu0 %vm92_vm0, %v540_v29  ;;  %v415_v13 = vmul.f32 1.442695, %v412_v3  ;;  %v433_v14 = vmul.f32 1.442695, %v430_v5 }
  0x34   :  { %550 = vpow2.f32 %v413_v9 }
  0x35   :  { %552 = vpow2.f32 %v431_v11 }
  0x36   :  { %554 = vpow2.f32 %v415_v13 }
  0x37   :  { %556 = vpow2.f32 %v433_v14 }
  0x38   :  { %509 = vmatmul.mubr.msk.bf16.vlgmr.msra.gmra.mrb[4].mxu1 %vm92_vm0, %v540_v29 }
  0x39   :  { %347 = vmatprep.mubr.bf16.mxu1 %v644_v4  ;;  %v543_v4 = vpop.eup %542 }
  0x3a   :  { %528 = vmatmul.mubr.msk.bf16.vlgmr.msra.gmra.mrb[8].mxu0 %vm92_vm0, %v541_v30  ;;  %v545_v6 = vpop.eup %544  ;;  %v213_v38 = vmul.f32 0.33333334, %v543_v4 }
  0x3b   :  { %v547_v10 = vpop.eup %546  ;;  %v229_v15 = vadd.f32 %v545_v6, %v543_v4  ;;  %v231_v42 = vmul.f32 0.2, %v545_v6 }
  0x3c   :  { %v549_v12 = vpop.eup %548  ;;  %v214_v49 = vmul.f32 0.33333334, %v547_v10 }
  0x3d   :  { %v230_v16 = vadd.f32 %v549_v12, %v547_v10  ;;  %558 = vrcp.f32 %v229_v15  ;;  %v232_v51 = vmul.f32 0.2, %v549_v12 }
  0x3e   :  { %v741_v17 = vpop.eup %550 }
  0x3f   :  { %560 = vrcp.f32 %v230_v16  ;;  %v743_v18 = vpop.eup %552 }
  0x40   :  { %510 = vmatmul.mubr.msk.bf16.gmra.mrb[8].mxu1 %vm92_vm0, %v541_v30  ;;  %v745_v20 = vpop.eup %554  ;;  %v435_v27 = vadd.f32 %v743_v18, %v741_v17 }
  0x41   :  { %v747_v22 = vpop.eup %556 }
  0x42   :  { %v436_v30 = vadd.f32 %v747_v22, %v745_v20  ;;  %562 = vrcp.f32 %v435_v27 }
  0x44   :  { %564 = vrcp.f32 %v436_v30 }
  0x47   :  { %v559_v25 = vpop.eup %558 }
  0x48   :  { %v239_v32 = vmul.f32 %v559_v25, %v229_v15 }
  0x49   :  { %v561_v28 = vpop.eup %560 }
  0x4a   :  { %v240_v34 = vmul.f32 %v561_v28, %v230_v16  ;;  %v241_v43 = vsub.f32 2.0, %v239_v32 }
  0x4c   :  { %v242_v47 = vsub.f32 2.0, %v240_v34  ;;  %v243_v54 = vmul.f32 %v559_v25, %v241_v43  ;;  %v563_v3 = vpop.eup %562 }
  0x4e   :  { %v244_v57 = vmul.f32 %v561_v28, %v242_v47  ;;  %v565_v13 = vpop.eup %564  ;;  %v419_v28 = vmul.f32 0.33333334, %v741_v17 }
  0x4f   :  { %v446_v25 = vmul.f32 %v565_v13, %v436_v30 }
  0xfd   :  { %v133_v19 = vpop.f32.mrb[0].mxu0 }
  0xfe   :  { %v135_v21 = vpop.f32.mrb[1].mxu0 }
  0xff   :  { %v201_v23 = vadd.f32 %v135_v21, %v133_v19  ;;  %v137_v24 = vpop.f32.mrb[2].mxu0  ;;  %v445_v21 = vmul.f32 %v563_v3, %v435_v27 }
 0x100   :  { %v139_v26 = vpop.f32.mrb[3].mxu0 }
 0x101   :  { %v202_v29 = vadd.f32 %v139_v26, %v137_v24  ;;  %v447_v32 = vsub.f32 2.0, %v445_v21 }
 0x103   :  { %v523_v31 = vpop.f32.mrb[0].mxu1  ;;  %v449_v30 = vmul.f32 %v563_v3, %v447_v32 }
 0x104   :  { %v186_v33 = vpop.f32.mrb[1].mxu1 }
 0x105   :  { %v203_v35 = vadd.f32 %v201_v23, %v186_v33  ;;  %v143_v36 = vpop.f32.mrb[4].mxu0  ;;  %v524_v37 = vpop.f32.mrb[2].mxu1 }
 0x106   :  { %v145_v39 = vpop.f32.mrb[5].mxu0  ;;  %v189_v40 = vpop.f32.mrb[3].mxu1 }
 0x107   :  { %v219_v41 = vadd.f32 %v145_v39, %v143_v36  ;;  %v204_v44 = vadd.f32 %v202_v29, %v189_v40  ;;  %v147_v45 = vpop.f32.mrb[6].mxu0  ;;  %v215_v52 = vmul.f32 %v213_v38, %v203_v35  ;;  %v438_v36 = vmul.f32 0.2, %v747_v22 }
 0x108   :  { %v149_v46 = vpop.f32.mrb[7].mxu0 }
 0x109   :  { %v221_v48 = vadd.f32 %v523_v31, %v219_v41  ;;  %v220_v50 = vadd.f32 %v149_v46, %v147_v45  ;;  %v216_v60 = vmul.f32 %v214_v49, %v204_v44  ;;  %v437_v31 = vmul.f32 0.2, %v743_v18 }
 0x10b   :  { %v233_v53 = vmul.f32 %v231_v42, %v221_v48  ;;  %v222_v55 = vadd.f32 %v524_v37, %v220_v50  ;;  %v339_v56 = vpop.f32.mrb[4].mxu1 }
 0x10c   :  { %v341_v58 = vpop.f32.mrb[5].mxu1 }
 0x10d   :  { %v235_v59 = vadd.f32 %v233_v53, %v215_v52  ;;  %v234_v61 = vmul.f32 %v232_v51, %v222_v55  ;;  %v407_v62 = vadd.f32 %v341_v58, %v339_v56  ;;  %v343_v63 = vpop.f32.mrb[6].mxu1  ;;  %v529_v2 = vpop.f32.mrb[8].mxu0 }
 0x10e   :  { %v345_v4 = vpop.f32.mrb[7].mxu1  ;;  %v392_v5 = vpop.f32.mrb[9].mxu0 }
 0x10f   :  { %v245_v6 = vmul.f32 %v243_v54, %v235_v59  ;;  %v236_v9 = vadd.f32 %v234_v61, %v216_v60  ;;  %v408_v10 = vadd.f32 %v345_v4, %v343_v63  ;;  %v409_v11 = vadd.f32 %v407_v62, %v392_v5  ;;  %v530_v12 = vpop.f32.mrb[10].mxu0 }
 0x110   :  { %v395_v14 = vpop.f32.mrb[11].mxu0 }
 0x111   :  { %v247_v15 = vsub.f32 %v688_v0, %v245_v6  ;;  %251 = vst [vmem:[#allocation8] sm:$0xff] %v245_v6  ;;  %v246_v16 = vmul.f32 %v244_v57, %v236_v9  ;;  %v410_v19 = vadd.f32 %v408_v10, %v395_v14  ;;  %v420_v0 = vmul.f32 0.33333334, %v745_v20 }
 0x112   :  { %v421_v37 = vmul.f32 %v419_v28, %v409_v11 }
 0x113   :  { %249 = vst [vmem:[#allocation7] sm:$0xff] %v247_v15  ;;  %v248_v23 = vsub.f32 %v693_v1, %v246_v16  ;;  %252 = vst [vmem:[#allocation8 + $0x8] sm:$0xff] %v246_v16  ;;  %v349_v24 = vpop.f32.mrb[8].mxu1  ;;  %v448_v1 = vsub.f32 2.0, %v446_v25  ;;  %v422_v40 = vmul.f32 %v420_v0, %v410_v19 }
 0x114   :  { %v351_v26 = vpop.f32.mrb[9].mxu1 }
 0x115   :  { %250 = vst [vmem:[#allocation7 + $0x8] sm:$0xff] %v248_v23  ;;  %v425_v29 = vadd.f32 %v351_v26, %v349_v24  ;;  %v353_v33 = vpop.f32.mrb[10].mxu1  ;;  %v450_v42 = vmul.f32 %v565_v13, %v448_v1 }
 0x116   :  { %v355_v34 = vpop.f32.mrb[11].mxu1 }
 0x117   :  { %v427_v35 = vadd.f32 %v529_v2, %v425_v29  ;;  %v426_v27 = vadd.f32 %v355_v34, %v353_v33 }
 0x119   :  { %v439_v38 = vmul.f32 %v437_v31, %v427_v35  ;;  %v428_v39 = vadd.f32 %v530_v12, %v426_v27 }
 0x11b   :  { %v441_v41 = vadd.f32 %v439_v38, %v421_v37  ;;  %v440_v17 = vmul.f32 %v438_v36, %v428_v39 }
 0x11d   :  { %v451_v18 = vmul.f32 %v449_v30, %v441_v41  ;;  %v442_v43 = vadd.f32 %v440_v17, %v422_v40 }
 0x11f   :  { %v453_v20 = vsub.f32 %v704_v7, %v451_v18  ;;  %459 = vst [vmem:[#allocation8 + $0x10] sm:$0xff] %v451_v18  ;;  %v452_v44 = vmul.f32 %v450_v42, %v442_v43 }
 0x121   :  { %456 = vst [vmem:[#allocation7 + $0x10] sm:$0xff] %v453_v20  ;;  %v454_v22 = vsub.f32 %v709_v8, %v452_v44  ;;  %460 = vst [vmem:[#allocation8 + $0x18] sm:$0xff] %v452_v44 }
 0x122   :  { %601 = shalt.err (!%p598_p0)
}
 0x123   :  { %s602_s26 = scalar_lea.hbm %s797_s5, 512 }
 0x124   :  { %p603_p1 = scmp.ne.s32.totalorder %s797_s5, %s602_s26  ;;  %p606_p2 = scmp.lt.u32.totalorder %s602_s26, %s797_s5 }
 0x126   :  { %p608_p3 = pnand %p606_p2, %p603_p1 }
 0x128   :  { %611 = shalt.err (!%p608_p3)
}
 0x129   :  { %s647_s29 = smov 128   ;;  %s648_s30 = smov 8   ;;  %457 = vst [vmem:[#allocation7 + $0x18] sm:$0xff] %v454_v22 }
 0x12a   :  { %484 = dma.vmem_to_hbm [thread:$0]  %s479_s20, 512, %s797_s5, [#allocation9], %s647_s29, %s647_s29, %s648_s30  }
 0x12b   :  { %s612_s8 = scalar_lea.vmem %s761_s22, 512  ;;  %p617_p5 = scmp.lt.s32.totalorder %s761_s22, %s761_s22 }
 0x12c   :  { %p613_p4 = scmp.ne.s32.totalorder %s761_s22, %s612_s8  ;;  %p618_p6 = scmp.lt.s32.totalorder %s612_s8, %s612_s8 }
 0x12e   :  { %p619_p7 = por %p618_p6, %p617_p5 }
 0x130   :  { %p620_p8 = pnand %p619_p7, %p613_p4 }
 0x132   :  { %623 = shalt.err (!%p620_p8)
}
 0x133   :  { %s624_s3 = scalar_lea.hbm %s796_s4, 512 }
 0x134   :  { %p625_p9 = scmp.ne.s32.totalorder %s796_s4, %s624_s3  ;;  %p628_p10 = scmp.lt.u32.totalorder %s624_s3, %s796_s4 }
 0x136   :  { %p630_p11 = pnand %p628_p10, %p625_p9 }
 0x138   :  { %633 = shalt.err (!%p630_p11)
}
 0x139   :  { %472 = dma.vmem_to_hbm [thread:$0]  %s761_s22, 512, %s796_s4, [#allocation3], %s647_s29, %s647_s29, %s648_s30  }
 0x13a   :  { %638 = dma.done.wait [#allocation3], 512  }
 0x13b   :  { %639 = vsyncadd [#allocation3], 4294966784 }
 0x13c   :  { %640 = dma.done.wait [#allocation9], 512  }
 0x13d   :  { %641 = vsyncadd [#allocation9], 4294966784 }
 0x13e   :  { %491 = vsyncpa [#allocation3], 1 }
 0x13f   :  { %492 = vsyncpa [#allocation9], 1 }
 0x140   :  { %493 = vsyncpa [#allocation4], 1 }
 0x141   :  { %494 = vsyncpa [#allocation6], 1 }

</bundles_post_ra>
